<compile_context>
chip_gen: v5e
topology: v5e:2x2
jax: 0.10.0
libtpu: 0.0.40
codegen_flags: <defaults>
</compile_context>

<pallas_src>
import functools

import jax
import jax.numpy as jnp
from jax.experimental import pallas as pl
from jax.experimental.pallas import tpu as pltpu


def _round_up(x, m):
    return -(-x // m) * m


# ----------------------------------------------------------------------------
# Kernel: one grid step == one decoder timestep.
# ----------------------------------------------------------------------------
def _attn_decoder_step_kernel(emb_ref, hid0_ref, enc_ref, wk32_ref, wk64_ref,
                              b_ref, out_ref, h_ref, *, H, S, NSYM, B,
                              col_wih, col_wih_w, col_wca, col_wca_w,
                              col_wo, col_wo_w, out_w):
    H2, H4, H6 = 2 * H, 4 * H, 6 * H
    t = pl.program_id(0)
    mx = wk32_ref.dtype                      # MXU operand dtype (bf16)

    # Initialize the VMEM-carried hidden state from the input on step 0.
    @pl.when(t == 0)
    def _():
        h_ref[...] = hid0_ref[...]

    hid = h_ref[...]                         # (B, 2H) f32, carried across steps
    emb = emb_ref[0]                         # (B, H)  f32, per-step input

    # ---- fused emb-side matmul over the full 128-aligned tile ---------------
    # wk32[:, :col_wih] = [wc_e | wa_e | 0-pad]  -> slice the *result*.
    emb_prod = jnp.dot(emb.astype(mx), wk32_ref[:, :col_wih],
                       preferred_element_type=jnp.float32)      # (B, 128)
    comb_e = emb_prod[:, :H]
    logits_e = emb_prod[:, H:H + S]

    # ---- fused hid-side matmul over the full 128-aligned tile ---------------
    # wk64[:, :col_wca] = [whh | wa_h | 0-pad]
    # TODO(synk): on v5e, if a bundle dump shows vreg spills, split this dot
    # (issue hid@wa_h early, defer hid@whh to just before the GRU step).
    hid_prod = jnp.dot(hid.astype(mx), wk64_ref[:, :col_wca],
                       preferred_element_type=jnp.float32)      # (B, 256)
    gh = hid_prod[:, :H6]
    logits_h = hid_prod[:, H6:H6 + S]

    # ---- attn_weights = softmax(attn(cat(emb, hid))) -------------------------
    logits = logits_e + logits_h + b_ref[:, 9 * H:9 * H + S]     # (B, S)
    logits = logits - jnp.max(logits, axis=-1, keepdims=True)
    num = jnp.exp(logits)
    denom = jnp.sum(num, axis=-1, keepdims=True)
    aw = num * pl.reciprocal(denom, approx=True)                 # (B, S)

    # ---- attn_applied = bmm(aw.unsqueeze(1), encoder_outputs) ----------------
    # enc is resident in (S, B, 2H) layout: S lane-dense VPU FMAs.
    # TODO(synk): on v5e pack enc as (S/2, B, 4H) pairs + pltpu.roll fold to
    # halve the half-lane-utilized FMAs (2H=64 < 128 lanes).
    attn_applied = aw[:, 0:1] * enc_ref[0]
    for s in range(1, S):
        attn_applied = attn_applied + aw[:, s:s + 1] * enc_ref[s]  # (B, 2H) f32

    # ---- output = relu(attn_combine(cat(emb, attn_applied))) -----------------
    comb_full = jnp.dot(attn_applied.astype(mx),
                        wk64_ref[:, col_wca:col_wca + col_wca_w],
                        preferred_element_type=jnp.float32)      # (B, 128)
    comb = comb_e + comb_full[:, :H] + b_ref[:, 8 * H:9 * H]
    x = jnp.maximum(comb, 0.0)                                   # (B, H)

    # ---- single-step GRU(H -> 2H), PyTorch gate order (r, z, n) --------------
    gi_full = jnp.dot(x.astype(mx), wk32_ref[:, col_wih:col_wih + col_wih_w],
                      preferred_element_type=jnp.float32)        # (B, 256)
    gi = gi_full[:, :H6]
    rz = jax.nn.sigmoid(gi[:, :H4] + gh[:, :H4] + b_ref[:, :H4]) # (B, 4H)
    r = rz[:, :H2]
    z = rz[:, H2:H4]
    n = jnp.tanh(gi[:, H4:H6] + b_ref[:, H4:H4 + H2]
                 + r * (gh[:, H4:H6] + b_ref[:, H4 + H2:H4 + 2 * H2]))
    h_new = (1.0 - z) * n + z * hid                              # (B, 2H)

    # ---- output = out(gru_output) --------------------------------------------
    out_full = jnp.dot(h_new.astype(mx), wk64_ref[:, col_wo:col_wo + col_wo_w],
                       preferred_element_type=jnp.float32)       # (B, 128)
    out = out_full[:, :NSYM] + b_ref[:, 9 * H + S:9 * H + S + NSYM]

    # Carry hidden state; write one lane-dense output slab for this step.
    h_ref[...] = h_new
    pieces = [h_new, out, aw]
    pad_w = out_w - (H2 + NSYM + S)
    if pad_w > 0:
        pieces.append(jnp.zeros((B, pad_w), jnp.float32))
    out_ref[0] = jnp.concatenate(pieces, axis=-1)


# ----------------------------------------------------------------------------
# Parameter construction / packing
# ----------------------------------------------------------------------------
def init_params(key, hidden_size, output_size, num_symbols):
    """Deterministic synthetic parameters, PyTorch-style shapes."""
    H, S = hidden_size, output_size
    ks = jax.random.split(key, 10)
    scale = 0.1
    return {
        # nn.Linear(3H, S): weight (S, 3H), bias (S,)
        "attn_w": scale * jax.random.normal(ks[0], (S, 3 * H), jnp.float32),
        "attn_b": scale * jax.random.normal(ks[1], (S,), jnp.float32),
        # nn.Linear(3H, H)
        "comb_w": scale * jax.random.normal(ks[2], (H, 3 * H), jnp.float32),
        "comb_b": scale * jax.random.normal(ks[3], (H,), jnp.float32),
        # nn.GRU(H, 2H): weight_ih (6H, H), weight_hh (6H, 2H), biases (6H,)
        "w_ih": scale * jax.random.normal(ks[4], (6 * H, H), jnp.float32),
        "w_hh": scale * jax.random.normal(ks[5], (6 * H, 2 * H), jnp.float32),
        "b_ih": scale * jax.random.normal(ks[6], (6 * H,), jnp.float32),
        "b_hh": scale * jax.random.normal(ks[7], (6 * H,), jnp.float32),
        # nn.Linear(2H, num_symbols)
        "out_w": scale * jax.random.normal(ks[8], (num_symbols, 2 * H), jnp.float32),
        "out_b": scale * jax.random.normal(ks[9], (num_symbols,), jnp.float32),
    }


def pack_params(params, hidden_size, *, weight_dtype=jnp.bfloat16):
    """One-time packing into lane-dense, 128-column-tiled slabs."""
    H = hidden_size
    S = params["attn_w"].shape[0]
    NSYM = params["out_w"].shape[0]
    f32 = jnp.float32

    wa_t = params["attn_w"].T.astype(f32)          # (3H, S)
    wa_e, wa_h = wa_t[:H], wa_t[H:]                # (H, S), (2H, S)
    wc_t = params["comb_w"].T.astype(f32)          # (3H, H)
    wc_e, wc_a = wc_t[:H], wc_t[H:]                # (H, H), (2H, H)
    wih = params["w_ih"].T.astype(f32)             # (H, 6H)
    whh = params["w_hh"].T.astype(f32)             # (2H, 6H)
    wo = params["out_w"].T.astype(f32)             # (2H, NSYM)

    c_embprod = _round_up(H + S, 128)
    c_wih = _round_up(6 * H, 128)
    c_hidprod = _round_up(6 * H + S, 128)
    c_wca = _round_up(H, 128)
    c_wo = _round_up(NSYM, 128)

    def pad_cols(m, width):
        return jnp.pad(m, ((0, 0), (0, width - m.shape[1])))

    # K = H slab:  [ wc_e | wa_e | pad ] [ wih | pad ]    (each tile 128-multiple)
    wk32 = jnp.concatenate([
        pad_cols(jnp.concatenate([wc_e, wa_e], axis=1), c_embprod),
        pad_cols(wih, c_wih),
    ], axis=1).astype(weight_dtype)

    # K = 2H slab: [ whh | wa_h | pad ] [ wc_a | pad ] [ wo | pad ]
    wk64 = jnp.concatenate([
        pad_cols(jnp.concatenate([whh, wa_h], axis=1), c_hidprod),
        pad_cols(wc_a, c_wca),
        pad_cols(wo, c_wo),
    ], axis=1).astype(weight_dtype)

    b_ih = params["b_ih"].astype(f32)
    b_hh = params["b_hh"].astype(f32)
    # bias slab: [(b_ih+b_hh)_rz (4H) | b_ih_n (2H) | b_hh_n (2H) | bc (H) | ba (S) | bo (NSYM)]
    bias = jnp.concatenate([
        (b_ih + b_hh)[:4 * H],
        b_ih[4 * H:], b_hh[4 * H:],
        params["comb_b"].astype(f32),
        params["attn_b"].astype(f32),
        params["out_b"].astype(f32),
    ])[None, :]
    bias = jnp.pad(bias, ((0, 0),
                          (0, _round_up(bias.shape[1], 128) - bias.shape[1])))

    return {"wk32": wk32, "wk64": wk64, "bias": bias,
            "H": H, "S": S, "NSYM": NSYM}


# ----------------------------------------------------------------------------
# Wrappers
# ----------------------------------------------------------------------------
@functools.partial(jax.jit, static_argnames=("H", "S", "NSYM"))
def _decode_jit(emb_seq, hidden0, encoder_outputs, wk32, wk64, bias, *, H, S, NSYM):
    B = 64                                    # fixed by hidden.view(64, -1)
    T = emb_seq.shape[0]
    H2, H6 = 2 * H, 6 * H

    col_wih = _round_up(H + S, 128)
    col_wih_w = _round_up(H6, 128)
    col_wca = _round_up(H6 + S, 128)
    col_wca_w = _round_up(H, 128)
    col_wo = col_wca + col_wca_w
    col_wo_w = _round_up(NSYM, 128)
    out_w = _round_up(H2 + NSYM + S, 128)

    emb_seq = emb_seq.astype(jnp.float32)                               # (T, B, H)
    hid0 = hidden0.reshape(B, H2).astype(jnp.float32)                   # (B, 2H)
    # One transpose + cast per decode (amortized over all T steps).
    enc_t = jnp.transpose(encoder_outputs, (1, 0, 2)).astype(wk32.dtype)  # (S, B, 2H)

    kernel = functools.partial(
        _attn_decoder_step_kernel, H=H, S=S, NSYM=NSYM, B=B,
        col_wih=col_wih, col_wih_w=col_wih_w, col_wca=col_wca,
        col_wca_w=col_wca_w, col_wo=col_wo, col_wo_w=col_wo_w, out_w=out_w)

    # Advisory cost estimate so XLA can overlap surrounding HLO with the call.
    flops = 2 * T * B * (H * col_wih + H2 * col_wca + H2 * col_wca_w
                         + H * col_wih_w + H2 * col_wo_w) + 2 * T * B * S * H2
    transc = T * B * (6 * H + S + 1)
    bytes_accessed = (wk32.size * wk32.dtype.itemsize
                      + wk64.size * wk64.dtype.itemsize
                      + bias.size * 4 + enc_t.size * enc_t.dtype.itemsize
                      + hid0.size * 4 + emb_seq.size * 4 + T * B * out_w * 4)

    grid_spec = pltpu.PrefetchScalarGridSpec(
        num_scalar_prefetch=0,
        grid=(T,),
        in_specs=[
            pl.BlockSpec((1, B, H), lambda t: (t, 0, 0)),          # per-step embedded
            pl.BlockSpec((B, H2), lambda t: (0, 0)),               # initial hidden (resident)
            pl.BlockSpec((S, B, H2), lambda t: (0, 0, 0)),         # encoder outputs (resident)
            pl.BlockSpec(wk32.shape, lambda t: (0, 0)),            # K=H weight slab (resident)
            pl.BlockSpec(wk64.shape, lambda t: (0, 0)),            # K=2H weight slab (resident)
            pl.BlockSpec(bias.shape, lambda t: (0, 0)),            # bias slab (resident)
        ],
        out_specs=pl.BlockSpec((1, B, out_w), lambda t: (t, 0, 0)),
        scratch_shapes=[pltpu.VMEM((B, H2), jnp.float32)],         # carried hidden state
    )

    # TODO(synk): if H/S ever scale up (H>=512 or long encoder sequences),
    # re-derive the resident VMEM footprint against v7x's 64 MiB and set
    # vmem_limit_bytes explicitly; at these sizes total residency is < 1 MiB.
    slab = pl.pallas_call(
        kernel,
        grid_spec=grid_spec,
        out_shape=jax.ShapeDtypeStruct((T, B, out_w), jnp.float32),
        compiler_params=pltpu.CompilerParams(
            dimension_semantics=("arbitrary",),   # sequential: hidden carried in VMEM
        ),
        cost_estimate=pl.CostEstimate(flops=int(flops),
                                      transcendentals=int(transc),
                                      bytes_accessed=int(bytes_accessed)),
    )(emb_seq, hid0, enc_t, wk32, wk64, bias)

    out_seq = slab[:, :, H2:H2 + NSYM]                    # (T, B, NSYM)
    aw_seq = slab[:, :, H2 + NSYM:H2 + NSYM + S]          # (T, B, S)
    hid_T = slab[T - 1, :, :H2].reshape(1, B, H2)         # (1, B, 2H)
    return out_seq, hid_T, aw_seq


def attn_decoder_decode(emb_seq, hidden0, encoder_outputs, packed):
    """Run T fused decoder steps in one kernel launch (hidden carried in VMEM)."""
    H, S, NSYM = packed["H"], packed["S"], packed["NSYM"]
    B = 64
    # Tie packed slab shapes to the runtime shapes (guards against S/NSYM mismatch).
    assert emb_seq.ndim == 3 and emb_seq.shape[1:] == (B, H), emb_seq.shape
    assert hidden0.shape == (1, B, 2 * H), hidden0.shape
    assert encoder_outputs.shape == (B, S, 2 * H), encoder_outputs.shape
    assert packed["wk32"].shape == (H, _round_up(H + S, 128) + _round_up(6 * H, 128))
    assert packed["wk64"].shape == (2 * H, _round_up(6 * H + S, 128)
                                    + _round_up(H, 128) + _round_up(NSYM, 128))
    assert packed["bias"].shape == (1, _round_up(9 * H + S + NSYM, 128))
    return _decode_jit(emb_seq, hidden0, encoder_outputs,
                       packed["wk32"], packed["wk64"], packed["bias"],
                       H=H, S=S, NSYM=NSYM)


def attn_decoder_forward(embedded, hidden, encoder_outputs, packed):
    """Single-step forward matching the PyTorch module (T = 1)."""
    out_seq, hid_T, aw_seq = attn_decoder_decode(
        embedded[None], hidden, encoder_outputs, packed)
    return out_seq[0], hid_T, aw_seq[0]


# ----------------------------------------------------------------------------
# Pure-JAX reference mirroring the PyTorch forward
# ----------------------------------------------------------------------------
def _reference_forward(embedded, hidden, encoder_outputs, params, hidden_size):
    H = hidden_size
    hid = hidden.reshape(64, -1)
    all_info = jnp.concatenate([embedded, hid], axis=1)
    aw = jax.nn.softmax(all_info @ params["attn_w"].T + params["attn_b"], axis=-1)
    attn_applied = jnp.einsum("bs,bsd->bd", aw, encoder_outputs)
    x = jnp.concatenate([embedded, attn_applied], axis=1)
    x = jax.nn.relu(x @ params["comb_w"].T + params["comb_b"])
    gi = x @ params["w_ih"].T + params["b_ih"]
    gh = hid @ params["w_hh"].T + params["b_hh"]
    h2 = 2 * H
    r = jax.nn.sigmoid(gi[:, :h2] + gh[:, :h2])
    z = jax.nn.sigmoid(gi[:, h2:2 * h2] + gh[:, h2:2 * h2])
    n = jnp.tanh(gi[:, 2 * h2:] + r * gh[:, 2 * h2:])
    h_new = (1.0 - z) * n + z * hid
    out = h_new @ params["out_w"].T + params["out_b"]
    return out, h_new.reshape(1, 64, 2 * H), aw


if __name__ == "__main__":
    H = 32        # hidden_size
    S = 8         # output_size == encoder sequence length
    NSYM = 16     # num_symbols
    B = 64        # fixed by hidden.view(64, -1)
    T = 4         # decode steps fused into one kernel launch

    key = jax.random.PRNGKey(0)
    k_emb, k_hid, k_enc, k_par = jax.random.split(key, 4)

    emb_seq = jax.random.normal(k_emb, (T, B, H), jnp.float32)
    hidden = jax.random.normal(k_hid, (1, B, 2 * H), jnp.float32)
    encoder_outputs = jax.random.normal(k_enc, (B, S, 2 * H), jnp.float32)
    params = init_params(k_par, H, S, NSYM)
    packed = pack_params(params, H)   # one-time packing (bf16 weight slabs)

    # --- single-step check (exact semantics of the PyTorch forward) ----------
    out, hid_new, attn_w = attn_decoder_forward(
        emb_seq[0], hidden, encoder_outputs, packed)
    jax.block_until_ready((out, hid_new, attn_w))
    ref_out, ref_hid, ref_aw = _reference_forward(
        emb_seq[0], hidden, encoder_outputs, params, H)
    # Tolerance covers bf16 weight/activation rounding on the MXU path plus the
    # EUP approximate reciprocal in the softmax (each well under 1e-2 here).
    assert jnp.allclose(out, ref_out, atol=1e-2, rtol=1e-2)
    assert jnp.allclose(hid_new, ref_hid, atol=1e-2, rtol=1e-2)
    assert jnp.allclose(attn_w, ref_aw, atol=1e-2, rtol=1e-2)

    # --- multi-step check: hidden state carried in VMEM across the T-grid ----
    out_seq, hid_T, aw_seq = attn_decoder_decode(
        emb_seq, hidden, encoder_outputs, packed)
    jax.block_until_ready((out_seq, hid_T, aw_seq))
    ref_h = hidden
    for t in range(T):
        r_out, ref_h, r_aw = _reference_forward(
            emb_seq[t], ref_h, encoder_outputs, params, H)
        # Looser tolerance: bf16 hidden-state error compounds across steps.
        assert jnp.allclose(out_seq[t], r_out, atol=2e-2, rtol=2e-2)
        assert jnp.allclose(aw_seq[t], r_aw, atol=2e-2, rtol=2e-2)
    assert jnp.allclose(hid_T, ref_h, atol=2e-2, rtol=2e-2)

    print("KERNEL_OK")
</pallas_src>

<mosaic_0001>
module attributes {stable_mosaic.version = 11 : i64} {
  func.func @_attn_decoder_step_kernel(%arg0: i32, %arg1: memref<1x64x32xf32, #tpu.memory_space<vmem>>, %arg2: memref<64x64xf32, #tpu.memory_space<vmem>>, %arg3: memref<8x64x64xbf16, #tpu.memory_space<vmem>>, %arg4: memref<32x384xbf16, #tpu.memory_space<vmem>>, %arg5: memref<64x512xbf16, #tpu.memory_space<vmem>>, %arg6: memref<1x384xf32, #tpu.memory_space<vmem>>, %arg7: memref<1x64x128xf32, #tpu.memory_space<vmem>>, %arg8: memref<64x64xf32, #tpu.memory_space<vmem>>) attributes {dimension_semantics = [#tpu.dimension_semantics<arbitrary>], iteration_bounds = array<i64: 1>, scalar_prefetch = 0 : i64, scratch_operands = 1 : i64, tpu.core_type = #tpu.core_type<tc>, window_params = [{transform_indices = @transform_0, window_bounds = array<i64: 1, 64, 32>}, {pipeline_mode = #tpu.pipeline_mode<synchronous>, transform_indices = @transform_1, window_bounds = array<i64: 64, 64>}, {pipeline_mode = #tpu.pipeline_mode<synchronous>, transform_indices = @transform_2, window_bounds = array<i64: 8, 64, 64>}, {pipeline_mode = #tpu.pipeline_mode<synchronous>, transform_indices = @transform_3, window_bounds = array<i64: 32, 384>}, {pipeline_mode = #tpu.pipeline_mode<synchronous>, transform_indices = @transform_4, window_bounds = array<i64: 64, 512>}, {pipeline_mode = #tpu.pipeline_mode<synchronous>, transform_indices = @transform_5, window_bounds = array<i64: 1, 384>}, {transform_indices = @transform_6, window_bounds = array<i64: 1, 64, 128>}]} {
    %c0_i32 = arith.constant 0 : i32
    %0 = arith.cmpi eq, %arg0, %c0_i32 : i32
    %1 = arith.extui %0 : i1 to i32
    %c0_i32_0 = arith.constant 0 : i32
    %2 = arith.cmpi ne, %1, %c0_i32_0 : i32
    scf.if %2 {
      %c0_53 = arith.constant 0 : index
      %c0_54 = arith.constant 0 : index
      %141 = vector.load %arg2[%c0_53, %c0_54] : memref<64x64xf32, #tpu.memory_space<vmem>>, vector<64x64xf32>
      %c0_55 = arith.constant 0 : index
      %c0_56 = arith.constant 0 : index
      %142 = vector.load %arg8[%c0_55, %c0_56] : memref<64x64xf32, #tpu.memory_space<vmem>>, vector<64x64xf32>
      tpu.vector_store %arg8[%c0_55, %c0_56], %141 {strides = array<i32>} : memref<64x64xf32, #tpu.memory_space<vmem>>, vector<64x64xf32>,
    } else {
    }
    %c0 = arith.constant 0 : index
    %c0_1 = arith.constant 0 : index
    %3 = vector.load %arg8[%c0, %c0_1] : memref<64x64xf32, #tpu.memory_space<vmem>>, vector<64x64xf32>
    %c0_2 = arith.constant 0 : index
    %c0_3 = arith.constant 0 : index
    %c0_4 = arith.constant 0 : index
    %4 = vector.load %arg1[%c0_2, %c0_3, %c0_4] : memref<1x64x32xf32, #tpu.memory_space<vmem>>, vector<1x64x32xf32>
    %5 = vector.shape_cast %4 : vector<1x64x32xf32> to vector<64x32xf32>
    %6 = arith.truncf %5 : vector<64x32xf32> to vector<64x32xbf16>
    %c0_5 = arith.constant 0 : index
    %c0_6 = arith.constant 0 : index
    %7 = vector.load %arg4[%c0_5, %c0_6] : memref<32x384xbf16, #tpu.memory_space<vmem>>, vector<32x128xbf16>
    %cst = arith.constant dense<0.000000e+00> : vector<64x128xf32>
    %8 = tpu.matmul %6, %7, %cst {dimension_numbers = #tpu.dot_dimension_numbers<[1], [0], [0], [1], [0, 0, 1, 1], [], []>} : vector<64x32xbf16>, vector<32x128xbf16>, vector<64x128xf32> -> vector<64x128xf32>
    %9 = vector.extract_strided_slice %8 {offsets = [0, 0], sizes = [64, 32], strides = [1, 1]} : vector<64x128xf32> to vector<64x32xf32>
    %10 = vector.extract_strided_slice %8 {offsets = [0, 32], sizes = [64, 8], strides = [1, 1]} : vector<64x128xf32> to vector<64x8xf32>
    %11 = arith.truncf %3 : vector<64x64xf32> to vector<64x64xbf16>
    %c0_7 = arith.constant 0 : index
    %c0_8 = arith.constant 0 : index
    %12 = vector.load %arg5[%c0_7, %c0_8] : memref<64x512xbf16, #tpu.memory_space<vmem>>, vector<64x256xbf16>
    %cst_9 = arith.constant dense<0.000000e+00> : vector<64x256xf32>
    %13 = tpu.matmul %11, %12, %cst_9 {dimension_numbers = #tpu.dot_dimension_numbers<[1], [0], [0], [1], [0, 0, 1, 1], [], []>} : vector<64x64xbf16>, vector<64x256xbf16>, vector<64x256xf32> -> vector<64x256xf32>
    %14 = vector.extract_strided_slice %13 {offsets = [0, 0], sizes = [64, 192], strides = [1, 1]} : vector<64x256xf32> to vector<64x192xf32>
    %15 = vector.extract_strided_slice %13 {offsets = [0, 192], sizes = [64, 8], strides = [1, 1]} : vector<64x256xf32> to vector<64x8xf32>
    %16 = arith.addf %10, %15 : vector<64x8xf32>
    %c0_10 = arith.constant 0 : index
    %c288 = arith.constant 288 : index
    %17 = vector.load %arg6[%c0_10, %c288] : memref<1x384xf32, #tpu.memory_space<vmem>>, vector<1x8xf32>
    %18 = vector.broadcast %17 : vector<1x8xf32> to vector<64x8xf32>
    %19 = arith.addf %16, %18 : vector<64x8xf32>
    %cst_11 = arith.constant dense<0xFF800000> : vector<64xf32>
    %20 = vector.multi_reduction <maximumf>, %19, %cst_11 [1] : vector<64x8xf32> to vector<64xf32>
    %21 = vector.shape_cast %20 : vector<64xf32> to vector<64x1xf32>
    %22 = vector.broadcast %21 : vector<64x1xf32> to vector<64x8xf32>
    %23 = arith.subf %19, %22 : vector<64x8xf32>
    %24 = math.exp %23 : vector<64x8xf32>
    %cst_12 = arith.constant dense<0.000000e+00> : vector<64xf32>
    %25 = vector.multi_reduction <add>, %24, %cst_12 [1] : vector<64x8xf32> to vector<64xf32>
    %26 = vector.shape_cast %25 : vector<64xf32> to vector<64x1xf32>
    %27 = tpu.reciprocal %26 {approx = true} : vector<64x1xf32> -> vector<64x1xf32>
    %28 = vector.broadcast %27 : vector<64x1xf32> to vector<64x8xf32>
    %29 = arith.mulf %24, %28 : vector<64x8xf32>
    %30 = vector.extract_strided_slice %29 {offsets = [0, 0], sizes = [64, 1], strides = [1, 1]} : vector<64x8xf32> to vector<64x1xf32>
    %c0_13 = arith.constant 0 : index
    %c0_14 = arith.constant 0 : index
    %c0_15 = arith.constant 0 : index
    %31 = vector.load %arg3[%c0_13, %c0_14, %c0_15] : memref<8x64x64xbf16, #tpu.memory_space<vmem>>, vector<1x64x64xbf16>
    %32 = vector.shape_cast %31 : vector<1x64x64xbf16> to vector<64x64xbf16>
    %33 = arith.extf %32 : vector<64x64xbf16> to vector<64x64xf32>
    %34 = vector.broadcast %30 : vector<64x1xf32> to vector<64x64xf32>
    %35 = arith.mulf %34, %33 : vector<64x64xf32>
    %36 = vector.extract_strided_slice %29 {offsets = [0, 1], sizes = [64, 1], strides = [1, 1]} : vector<64x8xf32> to vector<64x1xf32>
    %c1 = arith.constant 1 : index
    %c0_16 = arith.constant 0 : index
    %c0_17 = arith.constant 0 : index
    %37 = vector.load %arg3[%c1, %c0_16, %c0_17] : memref<8x64x64xbf16, #tpu.memory_space<vmem>>, vector<1x64x64xbf16>
    %38 = vector.shape_cast %37 : vector<1x64x64xbf16> to vector<64x64xbf16>
    %39 = arith.extf %38 : vector<64x64xbf16> to vector<64x64xf32>
    %40 = vector.broadcast %36 : vector<64x1xf32> to vector<64x64xf32>
    %41 = arith.mulf %40, %39 : vector<64x64xf32>
    %42 = arith.addf %35, %41 : vector<64x64xf32>
    %43 = vector.extract_strided_slice %29 {offsets = [0, 2], sizes = [64, 1], strides = [1, 1]} : vector<64x8xf32> to vector<64x1xf32>
    %c2 = arith.constant 2 : index
    %c0_18 = arith.constant 0 : index
    %c0_19 = arith.constant 0 : index
    %44 = vector.load %arg3[%c2, %c0_18, %c0_19] : memref<8x64x64xbf16, #tpu.memory_space<vmem>>, vector<1x64x64xbf16>
    %45 = vector.shape_cast %44 : vector<1x64x64xbf16> to vector<64x64xbf16>
    %46 = arith.extf %45 : vector<64x64xbf16> to vector<64x64xf32>
    %47 = vector.broadcast %43 : vector<64x1xf32> to vector<64x64xf32>
    %48 = arith.mulf %47, %46 : vector<64x64xf32>
    %49 = arith.addf %42, %48 : vector<64x64xf32>
    %50 = vector.extract_strided_slice %29 {offsets = [0, 3], sizes = [64, 1], strides = [1, 1]} : vector<64x8xf32> to vector<64x1xf32>
    %c3 = arith.constant 3 : index
    %c0_20 = arith.constant 0 : index
    %c0_21 = arith.constant 0 : index
    %51 = vector.load %arg3[%c3, %c0_20, %c0_21] : memref<8x64x64xbf16, #tpu.memory_space<vmem>>, vector<1x64x64xbf16>
    %52 = vector.shape_cast %51 : vector<1x64x64xbf16> to vector<64x64xbf16>
    %53 = arith.extf %52 : vector<64x64xbf16> to vector<64x64xf32>
    %54 = vector.broadcast %50 : vector<64x1xf32> to vector<64x64xf32>
    %55 = arith.mulf %54, %53 : vector<64x64xf32>
    %56 = arith.addf %49, %55 : vector<64x64xf32>
    %57 = vector.extract_strided_slice %29 {offsets = [0, 4], sizes = [64, 1], strides = [1, 1]} : vector<64x8xf32> to vector<64x1xf32>
    %c4 = arith.constant 4 : index
    %c0_22 = arith.constant 0 : index
    %c0_23 = arith.constant 0 : index
    %58 = vector.load %arg3[%c4, %c0_22, %c0_23] : memref<8x64x64xbf16, #tpu.memory_space<vmem>>, vector<1x64x64xbf16>
    %59 = vector.shape_cast %58 : vector<1x64x64xbf16> to vector<64x64xbf16>
    %60 = arith.extf %59 : vector<64x64xbf16> to vector<64x64xf32>
    %61 = vector.broadcast %57 : vector<64x1xf32> to vector<64x64xf32>
    %62 = arith.mulf %61, %60 : vector<64x64xf32>
    %63 = arith.addf %56, %62 : vector<64x64xf32>
    %64 = vector.extract_strided_slice %29 {offsets = [0, 5], sizes = [64, 1], strides = [1, 1]} : vector<64x8xf32> to vector<64x1xf32>
    %c5 = arith.constant 5 : index
    %c0_24 = arith.constant 0 : index
    %c0_25 = arith.constant 0 : index
    %65 = vector.load %arg3[%c5, %c0_24, %c0_25] : memref<8x64x64xbf16, #tpu.memory_space<vmem>>, vector<1x64x64xbf16>
    %66 = vector.shape_cast %65 : vector<1x64x64xbf16> to vector<64x64xbf16>
    %67 = arith.extf %66 : vector<64x64xbf16> to vector<64x64xf32>
    %68 = vector.broadcast %64 : vector<64x1xf32> to vector<64x64xf32>
    %69 = arith.mulf %68, %67 : vector<64x64xf32>
    %70 = arith.addf %63, %69 : vector<64x64xf32>
    %71 = vector.extract_strided_slice %29 {offsets = [0, 6], sizes = [64, 1], strides = [1, 1]} : vector<64x8xf32> to vector<64x1xf32>
    %c6 = arith.constant 6 : index
    %c0_26 = arith.constant 0 : index
    %c0_27 = arith.constant 0 : index
    %72 = vector.load %arg3[%c6, %c0_26, %c0_27] : memref<8x64x64xbf16, #tpu.memory_space<vmem>>, vector<1x64x64xbf16>
    %73 = vector.shape_cast %72 : vector<1x64x64xbf16> to vector<64x64xbf16>
    %74 = arith.extf %73 : vector<64x64xbf16> to vector<64x64xf32>
    %75 = vector.broadcast %71 : vector<64x1xf32> to vector<64x64xf32>
    %76 = arith.mulf %75, %74 : vector<64x64xf32>
    %77 = arith.addf %70, %76 : vector<64x64xf32>
    %78 = vector.extract_strided_slice %29 {offsets = [0, 7], sizes = [64, 1], strides = [1, 1]} : vector<64x8xf32> to vector<64x1xf32>
    %c7 = arith.constant 7 : index
    %c0_28 = arith.constant 0 : index
    %c0_29 = arith.constant 0 : index
    %79 = vector.load %arg3[%c7, %c0_28, %c0_29] : memref<8x64x64xbf16, #tpu.memory_space<vmem>>, vector<1x64x64xbf16>
    %80 = vector.shape_cast %79 : vector<1x64x64xbf16> to vector<64x64xbf16>
    %81 = arith.extf %80 : vector<64x64xbf16> to vector<64x64xf32>
    %82 = vector.broadcast %78 : vector<64x1xf32> to vector<64x64xf32>
    %83 = arith.mulf %82, %81 : vector<64x64xf32>
    %84 = arith.addf %77, %83 : vector<64x64xf32>
    %85 = arith.truncf %84 : vector<64x64xf32> to vector<64x64xbf16>
    %c0_30 = arith.constant 0 : index
    %c256 = arith.constant 256 : index
    %86 = vector.load %arg5[%c0_30, %c256] : memref<64x512xbf16, #tpu.memory_space<vmem>>, vector<64x128xbf16>
    %cst_31 = arith.constant dense<0.000000e+00> : vector<64x128xf32>
    %87 = tpu.matmul %85, %86, %cst_31 {dimension_numbers = #tpu.dot_dimension_numbers<[1], [0], [0], [1], [0, 0, 1, 1], [], []>} : vector<64x64xbf16>, vector<64x128xbf16>, vector<64x128xf32> -> vector<64x128xf32>
    %88 = vector.extract_strided_slice %87 {offsets = [0, 0], sizes = [64, 32], strides = [1, 1]} : vector<64x128xf32> to vector<64x32xf32>
    %89 = arith.addf %9, %88 : vector<64x32xf32>
    %c0_32 = arith.constant 0 : index
    %c256_33 = arith.constant 256 : index
    %90 = vector.load %arg6[%c0_32, %c256_33] : memref<1x384xf32, #tpu.memory_space<vmem>>, vector<1x32xf32>
    %91 = vector.broadcast %90 : vector<1x32xf32> to vector<64x32xf32>
    %92 = arith.addf %89, %91 : vector<64x32xf32>
    %cst_34 = arith.constant 0.000000e+00 : f32
    %93 = vector.broadcast %cst_34 : f32 to vector<64x32xf32>
    %94 = arith.maximumf %92, %93 : vector<64x32xf32>
    %95 = arith.truncf %94 : vector<64x32xf32> to vector<64x32xbf16>
    %c0_35 = arith.constant 0 : index
    %c128 = arith.constant 128 : index
    %96 = vector.load %arg4[%c0_35, %c128] : memref<32x384xbf16, #tpu.memory_space<vmem>>, vector<32x256xbf16>
    %cst_36 = arith.constant dense<0.000000e+00> : vector<64x256xf32>
    %97 = tpu.matmul %95, %96, %cst_36 {dimension_numbers = #tpu.dot_dimension_numbers<[1], [0], [0], [1], [0, 0, 1, 1], [], []>} : vector<64x32xbf16>, vector<32x256xbf16>, vector<64x256xf32> -> vector<64x256xf32>
    %98 = vector.extract_strided_slice %97 {offsets = [0, 0], sizes = [64, 192], strides = [1, 1]} : vector<64x256xf32> to vector<64x192xf32>
    %99 = vector.extract_strided_slice %98 {offsets = [0, 0], sizes = [64, 128], strides = [1, 1]} : vector<64x192xf32> to vector<64x128xf32>
    %100 = vector.extract_strided_slice %14 {offsets = [0, 0], sizes = [64, 128], strides = [1, 1]} : vector<64x192xf32> to vector<64x128xf32>
    %101 = arith.addf %99, %100 : vector<64x128xf32>
    %c0_37 = arith.constant 0 : index
    %c0_38 = arith.constant 0 : index
    %102 = vector.load %arg6[%c0_37, %c0_38] : memref<1x384xf32, #tpu.memory_space<vmem>>, vector<1x128xf32>
    %103 = vector.broadcast %102 : vector<1x128xf32> to vector<64x128xf32>
    %104 = arith.addf %101, %103 : vector<64x128xf32>
    %105 = arith.negf %104 : vector<64x128xf32>
    %106 = math.exp %105 : vector<64x128xf32>
    %cst_39 = arith.constant 1.000000e+00 : f32
    %107 = vector.broadcast %cst_39 : f32 to vector<64x128xf32>
    %108 = arith.addf %107, %106 : vector<64x128xf32>
    %109 = arith.divf %107, %108 : vector<64x128xf32>
    %110 = vector.extract_strided_slice %109 {offsets = [0, 0], sizes = [64, 64], strides = [1, 1]} : vector<64x128xf32> to vector<64x64xf32>
    %111 = vector.extract_strided_slice %109 {offsets = [0, 64], sizes = [64, 64], strides = [1, 1]} : vector<64x128xf32> to vector<64x64xf32>
    %112 = vector.extract_strided_slice %98 {offsets = [0, 128], sizes = [64, 64], strides = [1, 1]} : vector<64x192xf32> to vector<64x64xf32>
    %c0_40 = arith.constant 0 : index
    %c128_41 = arith.constant 128 : index
    %113 = vector.load %arg6[%c0_40, %c128_41] : memref<1x384xf32, #tpu.memory_space<vmem>>, vector<1x64xf32>
    %114 = vector.broadcast %113 : vector<1x64xf32> to vector<64x64xf32>
    %115 = arith.addf %112, %114 : vector<64x64xf32>
    %116 = vector.extract_strided_slice %14 {offsets = [0, 128], sizes = [64, 64], strides = [1, 1]} : vector<64x192xf32> to vector<64x64xf32>
    %c0_42 = arith.constant 0 : index
    %c192 = arith.constant 192 : index
    %117 = vector.load %arg6[%c0_42, %c192] : memref<1x384xf32, #tpu.memory_space<vmem>>, vector<1x64xf32>
    %118 = vector.broadcast %117 : vector<1x64xf32> to vector<64x64xf32>
    %119 = arith.addf %116, %118 : vector<64x64xf32>
    %120 = arith.mulf %110, %119 : vector<64x64xf32>
    %121 = arith.addf %115, %120 : vector<64x64xf32>
    %122 = math.tanh %121 : vector<64x64xf32>
    %cst_43 = arith.constant 1.000000e+00 : f32
    %123 = vector.broadcast %cst_43 : f32 to vector<64x64xf32>
    %124 = arith.subf %123, %111 : vector<64x64xf32>
    %125 = arith.mulf %124, %122 : vector<64x64xf32>
    %126 = arith.mulf %111, %3 : vector<64x64xf32>
    %127 = arith.addf %125, %126 : vector<64x64xf32>
    %128 = arith.truncf %127 : vector<64x64xf32> to vector<64x64xbf16>
    %c0_44 = arith.constant 0 : index
    %c384 = arith.constant 384 : index
    %129 = vector.load %arg5[%c0_44, %c384] : memref<64x512xbf16, #tpu.memory_space<vmem>>, vector<64x128xbf16>
    %cst_45 = arith.constant dense<0.000000e+00> : vector<64x128xf32>
    %130 = tpu.matmul %128, %129, %cst_45 {dimension_numbers = #tpu.dot_dimension_numbers<[1], [0], [0], [1], [0, 0, 1, 1], [], []>} : vector<64x64xbf16>, vector<64x128xbf16>, vector<64x128xf32> -> vector<64x128xf32>
    %131 = vector.extract_strided_slice %130 {offsets = [0, 0], sizes = [64, 16], strides = [1, 1]} : vector<64x128xf32> to vector<64x16xf32>
    %c0_46 = arith.constant 0 : index
    %c296 = arith.constant 296 : index
    %132 = vector.load %arg6[%c0_46, %c296] : memref<1x384xf32, #tpu.memory_space<vmem>>, vector<1x16xf32>
    %133 = vector.broadcast %132 : vector<1x16xf32> to vector<64x16xf32>
    %134 = arith.addf %131, %133 : vector<64x16xf32>
    %c0_47 = arith.constant 0 : index
    %c0_48 = arith.constant 0 : index
    %135 = vector.load %arg8[%c0_47, %c0_48] : memref<64x64xf32, #tpu.memory_space<vmem>>, vector<64x64xf32>
    tpu.vector_store %arg8[%c0_47, %c0_48], %127 {strides = array<i32>} : memref<64x64xf32, #tpu.memory_space<vmem>>, vector<64x64xf32>,
    %cst_49 = arith.constant 0.000000e+00 : f32
    %136 = vector.broadcast %cst_49 : f32 to vector<64x40xf32>
    %137 = tpu.concatenate %127, %134, %29, %136 in 1 : vector<64x64xf32>, vector<64x16xf32>, vector<64x8xf32>, vector<64x40xf32> -> vector<64x128xf32>
    %c0_50 = arith.constant 0 : index
    %c0_51 = arith.constant 0 : index
    %c0_52 = arith.constant 0 : index
    %138 = vector.load %arg7[%c0_50, %c0_51, %c0_52] : memref<1x64x128xf32, #tpu.memory_space<vmem>>, vector<1x64x128xf32>
    %139 = vector.shape_cast %138 : vector<1x64x128xf32> to vector<64x128xf32>
    %140 = vector.shape_cast %137 : vector<64x128xf32> to vector<1x64x128xf32>
    tpu.vector_store %arg7[%c0_50, %c0_51, %c0_52], %140 {strides = array<i32>} : memref<1x64x128xf32, #tpu.memory_space<vmem>>, vector<1x64x128xf32>,
    return
  }
  func.func @transform_0(%arg0: i32) -> (i32, i32, i32) {
    %c0_i32 = arith.constant 0 : i32
    %c0_i32_0 = arith.constant 0 : i32
    %c0_i32_1 = arith.constant 0 : i32
    return %arg0, %c0_i32, %c0_i32_0 : i32, i32, i32
  }
  func.func @transform_1(%arg0: i32) -> (i32, i32) {
    %c0_i32 = arith.constant 0 : i32
    %c0_i32_0 = arith.constant 0 : i32
    %c0_i32_1 = arith.constant 0 : i32
    return %c0_i32, %c0_i32_0 : i32, i32
  }
  func.func @transform_2(%arg0: i32) -> (i32, i32, i32) {
    %c0_i32 = arith.constant 0 : i32
    %c0_i32_0 = arith.constant 0 : i32
    %c0_i32_1 = arith.constant 0 : i32
    %c0_i32_2 = arith.constant 0 : i32
    return %c0_i32, %c0_i32_0, %c0_i32_1 : i32, i32, i32
  }
  func.func @transform_3(%arg0: i32) -> (i32, i32) {
    %c0_i32 = arith.constant 0 : i32
    %c0_i32_0 = arith.constant 0 : i32
    %c0_i32_1 = arith.constant 0 : i32
    return %c0_i32, %c0_i32_0 : i32, i32
  }
  func.func @transform_4(%arg0: i32) -> (i32, i32) {
    %c0_i32 = arith.constant 0 : i32
    %c0_i32_0 = arith.constant 0 : i32
    %c0_i32_1 = arith.constant 0 : i32
    return %c0_i32, %c0_i32_0 : i32, i32
  }
  func.func @transform_5(%arg0: i32) -> (i32, i32) {
    %c0_i32 = arith.constant 0 : i32
    %c0_i32_0 = arith.constant 0 : i32
    %c0_i32_1 = arith.constant 0 : i32
    return %c0_i32, %c0_i32_0 : i32, i32
  }
  func.func @transform_6(%arg0: i32) -> (i32, i32, i32) {
    %c0_i32 = arith.constant 0 : i32
    %c0_i32_0 = arith.constant 0 : i32
    %c0_i32_1 = arith.constant 0 : i32
    return %arg0, %c0_i32, %c0_i32_0 : i32, i32, i32
  }
}

</mosaic_0001>

<bundles_post_ra>
// kernel: _decode_jit.1
= control target key start
LH: loop header
LB: loop body
LE: loop exit
PB: predicated region body
PF: predicated region fallthrough
CT: control target
= control target key end

     0   :  { %vm36_vm0 = vcmask 523264   ;;  %vm81_vm1 = vcmask 261120   ;;  %s2222_s20 = smov 96   ;;  %vm298_vm2 = vcmask 326912   ;;  %vm379_vm3 = vcmask 64512   ;;  %s2231_s13 = smov 64   ;;  %s3210_s4 = inlined_call_operand.vmem [shape: bf16[64,512], index: 4, kind: input, shape index: {}]   ;;  %s3211_s1 = inlined_call_operand.vmem [shape: f32[64,64], index: 1, kind: input, shape index: {}]   ;;  %s3212_s3 = inlined_call_operand.vmem [shape: bf16[32,384], index: 3, kind: input, shape index: {}]   ;;  %s3213_s0 = inlined_call_operand.vmem [shape: f32[1,64,32], index: 0, kind: input, shape index: {}]   ;;  %s3214_s5 = inlined_call_operand.vmem [shape: f32[1,384], index: 5, kind: input, shape index: {}]   ;;  %s3215_s2 = inlined_call_operand.vmem [shape: bf16[8,64,64], index: 2, kind: input, shape index: {}]   ;;  %s3216_s6 = inlined_call_operand.vmem [shape: f32[1,64,128], index: 6, kind: output, shape index: {}]  }
   0x1   :  { %v1725_v0 = vld [vmem:[%s3210_s4 + $0x60] sm:$0xf]  ;;  %v1876_v1 = vld [vmem:[%s3210_s4 + $0x6c] sm:$0xf0]  ;;  %v1875_v2 = vld [vmem:[%s3210_s4 + $0x64] sm:$0xf] }
   0x2   :  { %v1726_v3 = vor.u32 %v1876_v1, %v1725_v0  ;;  %v1727_v4 = vld [vmem:[%s3210_s4 + $0x70] sm:$0xf0]  ;;  %v1717_v5 = vld [vmem:[%s3210_s4 + $0x40] sm:$0xf]  ;;  %v1874_v6 = vld [vmem:[%s3210_s4 + $0x4c] sm:$0xf0] }
   0x3   :  { %v1730_v7 = vor.u32 %v1875_v2, %v1727_v4  ;;  %v1873_v8 = vld [vmem:[%s3210_s4 + $0x44] sm:$0xf]  ;;  %v1719_v9 = vld [vmem:[%s3210_s4 + $0x50] sm:$0xf0]  ;;  %v1718_v10 = vor.u32 %v1874_v6, %v1717_v5  ;;  %v1709_v12 = vld [vmem:[%s3210_s4 + $0x20] sm:$0xf] }
   0x4   :  { %192 = vmatpush.bf16.msra.mxu1 %v1726_v3  ;;  %2048 = vmatpush.bf16.msra.mxu3 %v1726_v3  ;;  %v1722_v11 = vor.u32 %v1873_v8, %v1719_v9  ;;  %v1872_v13 = vld [vmem:[%s3210_s4 + $0x2c] sm:$0xf0]  ;;  %v1871_v14 = vld [vmem:[%s3210_s4 + $0x24] sm:$0xf]  ;;  %v1711_v15 = vld [vmem:[%s3210_s4 + $0x30] sm:$0xf0] }
   0x5   :  { %2052 = vmatpush.bf16.msra.mxu2 %v1730_v7  ;;  %v28_v16 = vld [vmem:[%s3211_s1] sm:$0xff]  ;;  %v29_v17 = vld [vmem:[%s3211_s1 + $0x8] sm:$0xff]  ;;  %v30_v18 = vld [vmem:[%s3211_s1 + $0x10] sm:$0xff]  ;;  %v1710_v20 = vor.u32 %v1872_v13, %v1709_v12  ;;  %v1714_v22 = vor.u32 %v1871_v14, %v1711_v15  ;;  %s2233_s21 = smov 48  }
   0x6   :  { %37 = vst.msk [vmem:[#allocation2] sm:$0xff] %vm36_vm0, %v28_v16  ;;  %v31_v19 = vld [vmem:[%s3211_s1 + $0x18] sm:$0xff]  ;;  %v32_v21 = vld [vmem:[%s3211_s1 + $0x20] sm:$0xff]  ;;  %v1870_v24 = vld [vmem:[%s3210_s4 + $0xc] sm:$0xf0] }
   0x7   :  { %38 = vst.msk [vmem:[#allocation2 + $0x8] sm:$0xff] %vm36_vm0, %v29_v17  ;;  %v1701_v23 = vld [vmem:[%s3210_s4] sm:$0xf]  ;;  %v33_v25 = vld [vmem:[%s3211_s1 + $0x28] sm:$0xff]  ;;  %v1869_v26 = vld [vmem:[%s3210_s4 + $0x4] sm:$0xf] }
   0x8   :  { %193 = vmatpush.bf16.msra.mxu1 %v1718_v10  ;;  %2049 = vmatpush.bf16.msra.mxu3 %v1718_v10  ;;  %39 = vst.msk [vmem:[#allocation2 + $0x10] sm:$0xff] %vm36_vm0, %v30_v18  ;;  %v1703_v27 = vld [vmem:[%s3210_s4 + $0x10] sm:$0xf0]  ;;  %v35_v29 = vld [vmem:[%s3211_s1 + $0x38] sm:$0xff]  ;;  %v1702_v30 = vor.u32 %v1870_v24, %v1701_v23  ;;  %v1868_v39 = vld [vmem:[%s3212_s3 + $0x20] sm:$0xf0] }
   0x9   :  { %2053 = vmatpush.bf16.msra.mxu2 %v1722_v11  ;;  %40 = vst.msk [vmem:[#allocation2 + $0x18] sm:$0xff] %vm36_vm0, %v31_v19  ;;  %v34_v28 = vld [vmem:[%s3211_s1 + $0x30] sm:$0xff]  ;;  %v1706_v31 = vor.u32 %v1869_v26, %v1703_v27  ;;  %v1693_v38 = vld [vmem:[%s3212_s3 + $0x18] sm:$0xf]  ;;  %v1689_v41 = vld [vmem:[%s3212_s3] sm:$0xf] }
   0xa   :  { %41 = vst.msk [vmem:[#allocation2 + $0x20] sm:$0xff] %vm36_vm0, %v32_v21  ;;  %v1694_v40 = vor.u32 %v1868_v39, %v1693_v38  ;;  %v1867_v42 = vld [vmem:[%s3212_s3 + $0x8] sm:$0xf0]  ;;  %v53_v44 = vld [vmem:[%s3213_s0] sm:$0xff]  ;;  %v55_v50 = vld [vmem:[%s3213_s0 + $0x10] sm:$0xff] }
   0xb   :  { %42 = vst.msk [vmem:[#allocation2 + $0x28] sm:$0xff] %vm36_vm0, %v33_v25  ;;  %v1690_v43 = vor.u32 %v1867_v42, %v1689_v41  ;;  %v54_v45 = vld [vmem:[%s3213_s0 + $0x8] sm:$0xff]  ;;  %v56_v51 = vld [vmem:[%s3213_s0 + $0x18] sm:$0xff]  ;;  %v57_v56 = vld [vmem:[%s3213_s0 + $0x20] sm:$0xff] }
   0xc   :  { %194 = vmatpush.bf16.msra.mxu1 %v1710_v20  ;;  %2050 = vmatpush.bf16.msra.mxu3 %v1710_v20  ;;  %43 = vst.msk [vmem:[#allocation2 + $0x30] sm:$0xff] %vm36_vm0, %v34_v28  ;;  %v61_v46 = vpack.c.bf16 %v54_v45, %v53_v44  ;;  %v62_v52 = vpack.c.bf16 %v56_v51, %v55_v50  ;;  %v58_v57 = vld [vmem:[%s3213_s0 + $0x28] sm:$0xff]  ;;  %v59_v59 = vld [vmem:[%s3213_s0 + $0x30] sm:$0xff]  ;;  %v60_v60 = vld [vmem:[%s3213_s0 + $0x38] sm:$0xff] }
   0xd   :  { %2054 = vmatpush.bf16.msra.mxu2 %v1714_v22  ;;  %v45_v32 = vld [vmem:[#allocation2] sm:$0xff]  ;;  %44 = vst.msk [vmem:[#allocation2 + $0x38] sm:$0xff] %vm36_vm0, %v35_v29  ;;  %100 = vmatpush.bf16.msra.mxu0 %v1694_v40  ;;  %v63_v58 = vpack.c.bf16 %v58_v57, %v57_v56  ;;  %v64_v61 = vpack.c.bf16 %v60_v60, %v59_v59 }
   0xe   :  { %v2349_v33 = vld [vmem:[#allocation2 + $0x8] sm:$0xff]  ;;  %v2132_v13 = vld [vmem:[%s3214_s5 + $0x2] ss:$0 sm:$0xff] }
   0xf   :  { %v123_v34 = vpack.c.bf16 %v2349_v33, %v45_v32  ;;  %v2352_v35 = vld [vmem:[#allocation2 + $0x10] sm:$0xff] }
  0x10   :  { %195 = vmatpush.bf16.msra.mxu1 %v1702_v30  ;;  %2051 = vmatpush.bf16.msra.mxu3 %v1702_v30  ;;  %v48_v36 = vld [vmem:[#allocation2 + $0x18] sm:$0xff] }
  0x11   :  { %2055 = vmatpush.bf16.msra.mxu2 %v1706_v31  ;;  %v124_v37 = vpack.c.bf16 %v48_v36, %v2352_v35  ;;  %101 = vmatpush.bf16.msra.mxu0 %v1690_v43  ;;  %v49_v47 = vld [vmem:[#allocation2 + $0x20] sm:$0xff] }
  0x12   :  { %v50_v48 = vld [vmem:[#allocation2 + $0x28] sm:$0xff] }
  0x13   :  { %1731 = vmatmul.msk.bf16.vlgmr.msra.gmra.mxu1 %vm36_vm0, %v123_v34  ;;  %1732 = vmatmul.msk.bf16.vlgmr.msra.gmra.mxu3 %vm36_vm0, %v124_v37  ;;  %v125_v49 = vpack.c.bf16 %v50_v48, %v49_v47  ;;  %v51_v53 = vld [vmem:[#allocation2 + $0x30] sm:$0xff] }
  0x14   :  { %221 = vmatpush.bf16.msrb.mxu1 %v1730_v7  ;;  %1736 = vmatmul.msk.bf16.vlgmr.msra.gmra.mxu2 %vm36_vm0, %v124_v37  ;;  %v52_v54 = vld [vmem:[#allocation2 + $0x38] sm:$0xff] }
  0x15   :  { %1695 = vmatmul.msk.bf16.vlgmr.msra.gmra.mxu0 %vm81_vm1, %v61_v46  ;;  %v126_v55 = vpack.c.bf16 %v52_v54, %v51_v53 }
  0x18   :  { %222 = vmatpush.bf16.msrb.mxu1 %v1722_v11 }
  0x1c   :  { %223 = vmatpush.bf16.msrb.mxu1 %v1714_v22 }
  0x20   :  { %224 = vmatpush.bf16.msrb.mxu1 %v1706_v31 }
  0x23   :  { %1735 = vmatmul.msk.bf16.vlgmr.msrb.gmra.mxu1 %vm36_vm0, %v123_v34  ;;  %1733 = vmatmul.msk.bf16.gmra.mxu3 %vm36_vm0, %v125_v49 }
  0x24   :  { %1737 = vmatmul.msk.bf16.gmra.mxu2 %vm36_vm0, %v125_v49 }
  0x25   :  { %1696 = vmatmul.msk.bf16.gmra.mxu0 %vm81_vm1, %v62_v52 }
  0x33   :  { %1734 = vmatmul.msk.bf16.gmra.mxu3 %vm36_vm0, %v126_v55 }
  0x34   :  { %1738 = vmatmul.msk.bf16.gmra.mxu2 %vm36_vm0, %v126_v55 }
  0x35   :  { %1697 = vmatmul.msk.bf16.gmra.mxu0 %vm81_vm1, %v63_v58 }
  0x45   :  { %1698 = vmatmul.msk.bf16.gmra.mxu0 %vm81_vm1, %v64_v61 }
  0x90   :  { %v2403_v62 = vpop.f32.mrf.mxu1 }
  0x92   :  { %v2439_v8 = vpop.f32.mrf.mxu0 }
  0x97   :  { %v2405_v63 = vpop.f32.mrf.mxu2 }
  0x98   :  { %258 = vrot.lane.b32.xlu1 %v2405_v63, %s2222_s20  ;;  %v2409_v0 = vpop.f32.mrf.mxu1 }
  0x9a   :  { %v2441_v9 = vpop.f32.mrf.mxu0 }
  0x9f   :  { %v2411_v1 = vpop.f32.mrf.mxu2 }
  0xa0   :  { %260 = vrot.lane.b32.xlu1 %v2411_v1, %s2222_s20  ;;  %v2415_v2 = vpop.f32.mrf.mxu1 }
  0xa1   :  { %254 = vrot.lane.b32.xlu0 %v2415_v2, %s2222_s20 }
  0xa2   :  { %v2443_v10 = vpop.f32.mrf.mxu0 }
  0xa7   :  { %v2419_v3 = vpop.f32.mrf.mxu2 }
  0xa8   :  { %262 = vrot.lane.b32.xlu2 %v2419_v3, %s2222_s20  ;;  %v2423_v4 = vpop.f32.mrf.mxu1 }
  0xa9   :  { %256 = vrot.lane.b32.xlu0 %v2423_v4, %s2222_s20 }
  0xaa   :  { %v2445_v11 = vpop.f32.mrf.mxu0 }
  0xaf   :  { %v2427_v5 = vpop.f32.mrf.mxu2 }
  0xb0   :  { %264 = vrot.lane.b32.xlu2 %v2427_v5, %s2222_s20 }
  0xb2   :  { %v2447_v12 = vpop.f32.mrf.mxu0 }
  0xb7   :  { %v2431_v6 = vpop.f32.mrf.mxu2 }
  0xb8   :  { %266 = vrot.lane.b32.xlu2 %v2431_v6, %s2222_s20 }
  0xba   :  { %v2453_v16 = vpop.f32.mrf.mxu0 }
  0xbf   :  { %v2435_v7 = vpop.f32.mrf.mxu2 }
  0xc0   :  { %268 = vrot.lane.b32.xlu2 %v2435_v7, %s2222_s20 }
  0xc2   :  { %v2457_v23 = vpop.f32.mrf.mxu0 }
  0xca   :  { %v2463_v32 = vpop.f32.mrf.mxu0 }
 0x102   :  { %v263_v14 = vpop.permute.xlu2 %262 }
 0x103   :  { %v282_v15 = vadd.f32 %v263_v14, %v2447_v12 }
 0x105   :  { %v294_v17 = vadd.f32 %v2132_v13, %v282_v15 }
 0x107   :  { %v311_v18 = vsel %vm298_vm2, %v294_v17, -inf }
 0x108   :  { %312 = vmax.xlane.f32.xlu1 %v311_v18 }
 0x10a   :  { %v259_v19 = vpop.permute.xlu1 %258  ;;  %v265_v20 = vpop.permute.xlu2 %264 }
 0x10b   :  { %v280_v21 = vadd.f32 %v259_v19, %v2443_v10  ;;  %v283_v40 = vadd.f32 %v265_v20, %v2453_v16 }
 0x10d   :  { %v292_v22 = vadd.f32 %v2132_v13, %v280_v21  ;;  %v295_v47 = vadd.f32 %v2132_v13, %v283_v40 }
 0x10f   :  { %v305_v24 = vsel %vm298_vm2, %v292_v22, -inf  ;;  %v314_v49 = vsel %vm298_vm2, %v295_v47, -inf }
 0x110   :  { %306 = vmax.xlane.f32.xlu2 %v305_v24 }
 0x112   :  { %v261_v25 = vpop.permute.xlu1 %260  ;;  %v267_v26 = vpop.permute.xlu2 %266 }
 0x113   :  { %v281_v27 = vadd.f32 %v261_v25, %v2445_v11  ;;  %v255_v28 = vpop.permute.xlu0 %254  ;;  %v284_v42 = vadd.f32 %v267_v26, %v2457_v23 }
 0x114   :  { %v278_v30 = vadd.f32 %v255_v28, %v2439_v8 }
 0x115   :  { %v293_v29 = vadd.f32 %v2132_v13, %v281_v27  ;;  %v296_v48 = vadd.f32 %v2132_v13, %v284_v42 }
 0x116   :  { %v290_v38 = vadd.f32 %v2132_v13, %v278_v30 }
 0x117   :  { %v308_v31 = vsel %vm298_vm2, %v293_v29, -inf  ;;  %v317_v50 = vsel %vm298_vm2, %v296_v48, -inf }
 0x118   :  { %309 = vmax.xlane.f32.xlu0 %v308_v31  ;;  %v299_v44 = vsel %vm298_vm2, %v290_v38, -inf }
 0x11a   :  { %v269_v34 = vpop.permute.xlu2 %268 }
 0x11b   :  { %v285_v36 = vadd.f32 %v269_v34, %v2463_v32  ;;  %v257_v37 = vpop.permute.xlu0 %256 }
 0x11c   :  { %v279_v39 = vadd.f32 %v257_v37, %v2441_v9 }
 0x11d   :  { %v297_v41 = vadd.f32 %v2132_v13, %v285_v36 }
 0x11e   :  { %v291_v43 = vadd.f32 %v2132_v13, %v279_v39 }
 0x11f   :  { %v320_v45 = vsel %vm298_vm2, %v297_v41, -inf }
 0x120   :  { %300 = vmax.xlane.f32.xlu0 %v299_v44  ;;  %321 = vmax.xlane.f32.xlu2 %v320_v45  ;;  %v302_v46 = vsel %vm298_vm2, %v291_v43, -inf }
 0x121   :  { %303 = vmax.xlane.f32.xlu1 %v302_v46 }
 0x128   :  { %315 = vmax.xlane.f32.xlu0 %v314_v49 }
 0x129   :  { %318 = vmax.xlane.f32.xlu1 %v317_v50 }
 0x17b   :  { %v313_v51 = vpop.xlane.xlu1 %312 }
 0x17c   :  { %v327_v52 = vsub.f32 %v294_v17, %v313_v51 }
 0x17e   :  { %v339_v53 = vmul.f32 1.442695, %v327_v52 }
 0x180   :  { %2135 = vpow2.f32 %v339_v53 }
 0x183   :  { %v307_v54 = vpop.xlane.xlu2 %306 }
 0x184   :  { %v325_v55 = vsub.f32 %v292_v22, %v307_v54 }
 0x186   :  { %v2474_v56 = vpop.eup %2135  ;;  %v335_v57 = vmul.f32 1.442695, %v325_v55  ;;  %v2223_v55 = vmov 34  }
 0x187   :  { %363 = vrot.lane.b32.xlu1 %v2474_v56, %s2222_s20 }
 0x188   :  { %2137 = vpow2.f32 %v335_v57  ;;  %2070 = vset.pattern.permute.xlu1 %v2223_v55  ;;  %v2224_v57 = vmov 33  }
 0x189   :  { %2069 = vset.pattern.permute.xlu0 %v2224_v57 }
 0x18b   :  { %v310_v58 = vpop.xlane.xlu0 %309 }
 0x18c   :  { %v326_v59 = vsub.f32 %v293_v29, %v310_v58  ;;  %v2225_v58 = vmov 32  }
 0x18d   :  { %2068 = vset.pattern.permute.xlu2 %v2225_v58 }
 0x18e   :  { %v2478_v60 = vpop.eup %2137  ;;  %v337_v61 = vmul.f32 1.442695, %v326_v59 }
 0x18f   :  { %359 = vrot.lane.b32.xlu2 %v2478_v60, %s2222_s20 }
 0x190   :  { %2139 = vpow2.f32 %v337_v61 }
 0x193   :  { %v301_v13 = vpop.xlane.xlu0 %300  ;;  %v322_v30 = vpop.xlane.xlu2 %321 }
 0x194   :  { %v323_v14 = vsub.f32 %v290_v38, %v301_v13  ;;  %v304_v15 = vpop.xlane.xlu1 %303  ;;  %v330_v34 = vsub.f32 %v297_v41, %v322_v30 }
 0x195   :  { %v324_v17 = vsub.f32 %v291_v43, %v304_v15  ;;  %v2227_v15 = vmov 38  }
 0x196   :  { %v2482_v18 = vpop.eup %2139  ;;  %v331_v19 = vmul.f32 1.442695, %v323_v14  ;;  %v345_v36 = vmul.f32 1.442695, %v330_v34  ;;  %v2226_v14 = vmov 35  }
 0x197   :  { %v333_v20 = vmul.f32 1.442695, %v324_v17  ;;  %361 = vrot.lane.b32.xlu0 %v2482_v18, %s2222_s20  ;;  %v2228_v17 = vmov 36  }
 0x198   :  { %2141 = vpow2.f32 %v331_v19  ;;  %v2230_v19 = vmov 37  }
 0x199   :  { %2143 = vpow2.f32 %v333_v20 }
 0x19b   :  { %v316_v21 = vpop.xlane.xlu0 %315 }
 0x19c   :  { %v328_v22 = vsub.f32 %v295_v47, %v316_v21  ;;  %v319_v24 = vpop.xlane.xlu1 %318 }
 0x19d   :  { %v329_v28 = vsub.f32 %v296_v48, %v319_v24 }
 0x19e   :  { %v2486_v25 = vpop.eup %2141  ;;  %v341_v26 = vmul.f32 1.442695, %v328_v22 }
 0x19f   :  { %355 = vrot.lane.b32.xlu0 %v2486_v25, %s2222_s20  ;;  %v2490_v27 = vpop.eup %2143  ;;  %v343_v29 = vmul.f32 1.442695, %v329_v28 }
 0x1a0   :  { %2145 = vpow2.f32 %v341_v26  ;;  %357 = vrot.lane.b32.xlu1 %v2490_v27, %s2222_s20 }
 0x1a1   :  { %2147 = vpow2.f32 %v343_v29 }
 0x1a2   :  { %2149 = vpow2.f32 %v345_v36 }
 0x1a6   :  { %v2494_v31 = vpop.eup %2145 }
 0x1a7   :  { %365 = vrot.lane.b32.xlu0 %v2494_v31, %s2222_s20  ;;  %v2498_v37 = vpop.eup %2147 }
 0x1a8   :  { %v2502_v38 = vpop.eup %2149 }
 0x1af   :  { %367 = vrot.lane.b32.xlu0 %v2498_v37, %s2222_s20 }
 0x1b7   :  { %369 = vrot.lane.b32.xlu0 %v2502_v38, %s2222_s20 }
 0x1e9   :  { %v360_v39 = vpop.permute.xlu2 %359 }
 0x1ea   :  { %v386_v40 = vsel %vm379_vm3, %v360_v39, 0.0 }
 0x1eb   :  { %387 = vadd.xlane.f32.xlu0 %v386_v40 }
 0x1f9   :  { %v364_v42 = vpop.permute.xlu1 %363 }
 0x1fa   :  { %v392_v41 = vsel %vm379_vm3, %v364_v42, 0.0 }
 0x1fb   :  { %393 = vadd.xlane.f32.xlu1 %v392_v41 }
 0x209   :  { %v362_v43 = vpop.permute.xlu0 %361 }
 0x20a   :  { %v389_v44 = vsel %vm379_vm3, %v362_v43, 0.0 }
 0x20b   :  { %390 = vadd.xlane.f32.xlu2 %v389_v44 }
 0x211   :  { %v356_v45 = vpop.permute.xlu0 %355 }
 0x212   :  { %v380_v46 = vsel %vm379_vm3, %v356_v45, 0.0  ;;  %v358_v47 = vpop.permute.xlu1 %357  ;;  %v2612_v45 = vld [vmem:[%s3215_s2 + $0x28] sm:$0xff]  }
 0x213   :  { %381 = vadd.xlane.f32.xlu2 %v380_v46  ;;  %v383_v48 = vsel %vm379_vm3, %v358_v47, 0.0  ;;  %v2618_v46 = vld [vmem:[%s3215_s2 + $0x48] sm:$0xff]  }
 0x214   :  { %384 = vadd.xlane.f32.xlu1 %v383_v48  ;;  %v1911_v48 = vunpack.c.l.bf16 %v2612_v45 }
 0x219   :  { %v366_v49 = vpop.permute.xlu0 %365 }
 0x21a   :  { %v395_v50 = vsel %vm379_vm3, %v366_v49, 0.0 }
 0x21b   :  { %396 = vadd.xlane.f32.xlu2 %v395_v50 }
 0x221   :  { %v368_v51 = vpop.permute.xlu0 %367 }
 0x222   :  { %v398_v52 = vsel %vm379_vm3, %v368_v51, 0.0  ;;  %v1927_v51 = vunpack.c.l.bf16 %v2618_v46 }
 0x223   :  { %399 = vadd.xlane.f32.xlu1 %v398_v52 }
 0x229   :  { %v370_v53 = vpop.permute.xlu0 %369 }
 0x22a   :  { %v401_v54 = vsel %vm379_vm3, %v370_v53, 0.0 }
 0x22b   :  { %402 = vadd.xlane.f32.xlu2 %v401_v54 }
 0x25e   :  { %v388_v59 = vpop.xlane.xlu0 %387 }
 0x25f   :  { %2151 = vrcp.f32 %v388_v59 }
 0x265   :  { %v2152_v61 = vpop.eup %2151 }
 0x266   :  { %v2518_v13 = vmul.f32 %v2152_v61, %v2478_v60  ;;  %v2229_v60 = vmov 39  }
 0x268   :  { %3223 = vst [vmem:[#allocation3_spill] sm:$0xff] %v2518_v13  ;;  %575 = vperm.xlu1 %2070, %v2518_v13   ;;  %510 = vperm.xlu0 %2069, %v2518_v13  }
 0x269   :  { %448 = vperm.xlu2 %2068, %v2518_v13  }
 0x26e   :  { %v394_v28 = vpop.xlane.xlu1 %393 }
 0x270   :  { %2071 = vset.pattern.permute.xlu1 %v2226_v14  ;;  %2074 = vset.pattern.permute.xlu0 %v2227_v15 }
 0x271   :  { %2072 = vset.pattern.permute.xlu2 %v2228_v17  ;;  %640 = vperm.xlu1 %2071, %v2518_v13  }
 0x272   :  { %835 = vperm.xlu0 %2074, %v2518_v13   ;;  %705 = vperm.xlu2 %2072, %v2518_v13  }
 0x279   :  { %2075 = vset.pattern.permute.xlu1 %v2229_v60 }
 0x27a   :  { %2073 = vset.pattern.permute.xlu2 %v2230_v19  ;;  %900 = vperm.xlu1 %2075, %v2518_v13  }
 0x27b   :  { %770 = vperm.xlu2 %2073, %v2518_v13   ;;  %2079 = vset.pattern.permute.xlu0 %v2226_v14 }
 0x27e   :  { %v391_v20 = vpop.xlane.xlu2 %390 }
 0x27f   :  { %2153 = vrcp.f32 %v391_v20 }
 0x282   :  { %2076 = vset.pattern.permute.xlu1 %v2225_v58 }
 0x283   :  { %2077 = vset.pattern.permute.xlu2 %v2224_v57 }
 0x285   :  { %v2154_v21 = vpop.eup %2153 }
 0x286   :  { %v2537_v22 = vmul.f32 %v2154_v21, %v2482_v18  ;;  %v382_v24 = vpop.xlane.xlu2 %381 }
 0x287   :  { %2155 = vrcp.f32 %v382_v24  ;;  %v385_v30 = vpop.xlane.xlu1 %384  ;;  %v2633_v24 = vld [vmem:[%s3215_s2 + $0x68] sm:$0xff]  }
 0x288   :  { %3224 = vst [vmem:[#allocation4_spill] sm:$0xff] %v2537_v22  ;;  %644 = vperm.xlu0 %2079, %v2537_v22   ;;  %514 = vperm.xlu2 %2077, %v2537_v22   ;;  %2157 = vrcp.f32 %v394_v28  ;;  %v1943_v28 = vunpack.c.l.bf16 %v2633_v24 }
 0x289   :  { %453 = vperm.xlu1 %2076, %v2537_v22   ;;  %2159 = vrcp.f32 %v385_v30 }
 0x28d   :  { %v2156_v26 = vpop.eup %2155 }
 0x28e   :  { %v2543_v29 = vmul.f32 %v2156_v26, %v2486_v25  ;;  %v2158_v18 = vpop.eup %2157 }
 0x28f   :  { %v2553_v25 = vmul.f32 %v2158_v18, %v2474_v56  ;;  %v2160_v34 = vpop.eup %2159  ;;  %v397_v56 = vpop.xlane.xlu2 %396  ;;  %v2646_v18 = vld [vmem:[%s3215_s2 + $0xa8] sm:$0xff]  }
 0x290   :  { %3225 = vst [vmem:[#allocation5_spill] sm:$0xff] %v2543_v29  ;;  %2088 = vset.pattern.permute.xlu0 %v2228_v17  ;;  %2078 = vset.pattern.permute.xlu2 %v2223_v55  ;;  %v2561_v36 = vmul.f32 %v2160_v34, %v2490_v27  ;;  %2161 = vrcp.f32 %v397_v56 }
 0x291   :  { %2080 = vset.pattern.permute.xlu1 %v2228_v17  ;;  %579 = vperm.xlu2 %2078, %v2537_v22  }
 0x292   :  { %709 = vperm.xlu1 %2080, %v2537_v22   ;;  %697 = vperm.xlu0 %2088, %v2543_v29  }
 0x296   :  { %v2162_v27 = vpop.eup %2161  ;;  %v400_v40 = vpop.xlane.xlu1 %399 }
 0x297   :  { %v2576_v39 = vmul.f32 %v2162_v27, %v2494_v31  ;;  %2163 = vrcp.f32 %v400_v40  ;;  %v2652_v27 = vld [vmem:[%s3215_s2 + $0xc8] sm:$0xff]   ;;  %v1975_v40 = vunpack.c.l.bf16 %v2646_v18 }
 0x299   :  { %2082 = vset.pattern.permute.xlu2 %v2227_v15  ;;  %3226 = vst [vmem:[#allocation6_spill] sm:$0xff] %v2576_v39 }
 0x29a   :  { %2081 = vset.pattern.permute.xlu1 %v2230_v19  ;;  %2095 = vset.pattern.permute.xlu0 %v2226_v14 }
 0x29b   :  { %839 = vperm.xlu2 %2082, %v2537_v22   ;;  %774 = vperm.xlu1 %2081, %v2537_v22  }
 0x29c   :  { %648 = vperm.xlu0 %2095, %v2553_v25  }
 0x29d   :  { %v2164_v41 = vpop.eup %2163 }
 0x29e   :  { %v403_v42 = vpop.xlane.xlu2 %402  ;;  %v2591_v43 = vmul.f32 %v2164_v41, %v2498_v37  ;;  %v2605_v37 = vld [vmem:[%s3215_s2 + $0x8] sm:$0xff]  }
 0x29f   :  { %2165 = vrcp.f32 %v403_v42  ;;  %v1895_v47 = vunpack.c.l.bf16 %v2605_v37 }
 0x2a0   :  { %3227 = vst [vmem:[#allocation7_spill] sm:$0xff] %v2591_v43 }
 0x2a3   :  { %2083 = vset.pattern.permute.xlu2 %v2229_v60  ;;  %2084 = vset.pattern.permute.xlu1 %v2225_v58 }
 0x2a4   :  { %2100 = vset.pattern.permute.xlu0 %v2225_v58  ;;  %904 = vperm.xlu2 %2083, %v2537_v22  }
 0x2a5   :  { %443 = vperm.xlu0 %2100, %v2561_v36   ;;  %438 = vperm.xlu1 %2084, %v2543_v29   ;;  %v2166_v49 = vpop.eup %2165 }
 0x2a6   :  { %v2624_v61 = vmul.f32 %v2166_v49, %v2502_v38  ;;  %v2640_v38 = vld [vmem:[%s3215_s2 + $0x88] sm:$0xff]  }
 0x2a7   :  { %v1959_v30 = vunpack.c.l.bf16 %v2640_v38 }
 0x2a8   :  { %3228 = vst [vmem:[#allocation8_spill] sm:$0xff] %v2624_v61 }
 0x2ac   :  { %2085 = vset.pattern.permute.xlu2 %v2224_v57 }
 0x2ad   :  { %2106 = vset.pattern.permute.xlu0 %v2227_v15  ;;  %2089 = vset.pattern.permute.xlu1 %v2230_v19 }
 0x2ae   :  { %831 = vperm.xlu0 %2106, %v2561_v36   ;;  %502 = vperm.xlu2 %2085, %v2543_v29  }
 0x2af   :  { %762 = vperm.xlu1 %2089, %v2543_v29  }
 0x2b6   :  { %2108 = vset.pattern.permute.xlu0 %v2225_v58  ;;  %2086 = vset.pattern.permute.xlu2 %v2223_v55 }
 0x2b7   :  { %2090 = vset.pattern.permute.xlu1 %v2227_v15  ;;  %567 = vperm.xlu2 %2086, %v2543_v29  }
 0x2b8   :  { %827 = vperm.xlu1 %2090, %v2543_v29   ;;  %463 = vperm.xlu0 %2108, %v2576_v39  }
 0x2bf   :  { %2087 = vset.pattern.permute.xlu2 %v2226_v14 }
 0x2c0   :  { %2092 = vset.pattern.permute.xlu1 %v2225_v58  ;;  %2113 = vset.pattern.permute.xlu0 %v2230_v19 }
 0x2c1   :  { %632 = vperm.xlu2 %2087, %v2543_v29   ;;  %458 = vperm.xlu1 %2092, %v2553_v25  }
 0x2c2   :  { %782 = vperm.xlu0 %2113, %v2576_v39  }
 0x2c3   :  { %v449_v31 = vpop.permute.xlu2 %448 }
 0x2c4   :  { %v478_v54 = vmul.f32 %v1895_v47, %v449_v31  ;;  %v1991_v47 = vunpack.c.l.bf16 %v2652_v27 }
 0x2c9   :  { %2091 = vset.pattern.permute.xlu2 %v2229_v60  ;;  %2096 = vset.pattern.permute.xlu1 %v2228_v17 }
 0x2ca   :  { %2116 = vset.pattern.permute.xlu0 %v2225_v58  ;;  %892 = vperm.xlu2 %2091, %v2543_v29  }
 0x2cb   :  { %713 = vperm.xlu1 %2096, %v2553_v25   ;;  %468 = vperm.xlu0 %2116, %v2591_v43  }
 0x2cc   :  { %v706_v44 = vpop.permute.xlu2 %705 }
 0x2cd   :  { %v730_v31 = vmul.f32 %v1959_v30, %v706_v44  ;;  %v1912_v30 = vunpack.c.h.bf16 %v2612_v45 }
 0x2d2   :  { %2093 = vset.pattern.permute.xlu2 %v2224_v57 }
 0x2d3   :  { %2097 = vset.pattern.permute.xlu1 %v2230_v19  ;;  %2121 = vset.pattern.permute.xlu0 %v2230_v19 }
 0x2d4   :  { %518 = vperm.xlu2 %2093, %v2553_v25   ;;  %778 = vperm.xlu1 %2097, %v2553_v25  }
 0x2d5   :  { %786 = vperm.xlu0 %2121, %v2591_v43   ;;  %v771_v50 = vpop.permute.xlu2 %770 }
 0x2da   :  { %v576_v52 = vpop.permute.xlu1 %575  ;;  %v511_v53 = vpop.permute.xlu0 %510 }
 0x2db   :  { %v535_v59 = vmul.f32 %v1911_v48, %v511_v53  ;;  %v600_v20 = vmul.f32 %v1927_v51, %v576_v52  ;;  %v2662_v48 = vld [vmem:[%s3215_s2 + $0xe8] sm:$0xff]   ;;  %v795_v51 = vmul.f32 %v1975_v40, %v771_v50  ;;  %v1928_v40 = vunpack.c.h.bf16 %v2618_v46 }
 0x2dc   :  { %2094 = vset.pattern.permute.xlu2 %v2223_v55  ;;  %2101 = vset.pattern.permute.xlu1 %v2224_v57  ;;  %v2007_v52 = vunpack.c.l.bf16 %v2662_v48 }
 0x2dd   :  { %2125 = vset.pattern.permute.xlu0 %v2223_v55  ;;  %583 = vperm.xlu2 %2094, %v2553_v25   ;;  %v543_v21 = vadd.f32 %v535_v59, %v478_v54 }
 0x2de   :  { %506 = vperm.xlu1 %2101, %v2561_v36   ;;  %595 = vperm.xlu0 %2125, %v2624_v61  }
 0x2df   :  { %v608_v26 = vadd.f32 %v600_v20, %v543_v21 }
 0x2e2   :  { %v515_v34 = vpop.permute.xlu2 %514 }
 0x2e3   :  { %v641_v56 = vpop.permute.xlu1 %640 }
 0x2e4   :  { %v665_v42 = vmul.f32 %v1943_v28, %v641_v56  ;;  %v836_v49 = vpop.permute.xlu0 %835  ;;  %v1896_v56 = vunpack.c.h.bf16 %v2605_v37  ;;  %v1960_v37 = vunpack.c.h.bf16 %v2640_v38  ;;  %v1992_v38 = vunpack.c.h.bf16 %v2652_v27 }
 0x2e5   :  { %2098 = vset.pattern.permute.xlu2 %v2227_v15  ;;  %v860_v54 = vmul.f32 %v1991_v47, %v836_v49  ;;  %v1944_v49 = vunpack.c.h.bf16 %v2633_v24  ;;  %v1976_v24 = vunpack.c.h.bf16 %v2646_v18 }
 0x2e6   :  { %2102 = vset.pattern.permute.xlu1 %v2223_v55  ;;  %2131 = vset.pattern.permute.xlu0 %v2229_v60  ;;  %v673_v41 = vadd.f32 %v665_v42, %v608_v26 }
 0x2e7   :  { %843 = vperm.xlu2 %2098, %v2553_v25   ;;  %571 = vperm.xlu1 %2102, %v2561_v36  }
 0x2e8   :  { %920 = vperm.xlu0 %2131, %v2624_v61   ;;  %v738_v44 = vadd.f32 %v730_v31, %v673_v41 }
 0x2ea   :  { %v803_v53 = vadd.f32 %v795_v51, %v738_v44 }
 0x2eb   :  { %v580_v59 = vpop.permute.xlu2 %579 }
 0x2ec   :  { %v868_v20 = vadd.f32 %v860_v54, %v803_v53  ;;  %v901_v21 = vpop.permute.xlu1 %900  ;;  %v601_v41 = vmul.f32 %v1928_v40, %v580_v59 }
 0x2ed   :  { %v925_v26 = vmul.f32 %v2007_v52, %v901_v21 }
 0x2ef   :  { %2099 = vset.pattern.permute.xlu2 %v2229_v60  ;;  %2103 = vset.pattern.permute.xlu1 %v2226_v14  ;;  %v2670_v28 = vadd.f32 %v925_v26, %v868_v20  ;;  %v2008_v20 = vunpack.c.h.bf16 %v2662_v48 }
 0x2f0   :  { %908 = vperm.xlu2 %2099, %v2553_v25   ;;  %636 = vperm.xlu1 %2103, %v2561_v36  }
 0x2f1   :  { %1415 = vrot.lane.b32.xlu0 %v2349_v33, %s2231_s13  ;;  %v536_v33 = vmul.f32 %v1912_v30, %v515_v34 }
 0x2f5   :  { %v840_v50 = vpop.permute.xlu2 %839 }
 0x2f6   :  { %v861_v26 = vmul.f32 %v1992_v38, %v840_v50 }
 0x2f8   :  { %2104 = vset.pattern.permute.xlu2 %v2228_v17  ;;  %2107 = vset.pattern.permute.xlu1 %v2229_v60 }
 0x2f9   :  { %701 = vperm.xlu2 %2104, %v2561_v36   ;;  %896 = vperm.xlu1 %2107, %v2561_v36  }
 0x2fa   :  { %1417 = vrot.lane.b32.xlu0 %v2352_v35, %s2231_s13  ;;  %v645_v51 = vpop.permute.xlu0 %644 }
 0x2fb   :  { %v454_v42 = vpop.permute.xlu1 %453  ;;  %v666_v35 = vmul.f32 %v1944_v49, %v645_v51  ;;  %v2737_v51 = vld [vmem:[%s3215_s2 + $0x30] sm:$0xff]  }
 0x2fc   :  { %v479_v31 = vmul.f32 %v1896_v56, %v454_v42 }
 0x2fe   :  { %v544_v45 = vadd.f32 %v536_v33, %v479_v31  ;;  %v905_v47 = vpop.permute.xlu2 %904  ;;  %v1809_v31 = vld [vmem:[%s3210_s4 + $0x68] sm:$0xf] }
 0x2ff   :  { %v926_v40 = vmul.f32 %v2008_v20, %v905_v47 }
 0x300   :  { %v609_v44 = vadd.f32 %v601_v41, %v544_v45  ;;  %v1880_v41 = vld [vmem:[%s3210_s4 + $0x74] sm:$0xf0] }
 0x301   :  { %2105 = vset.pattern.permute.xlu2 %v2230_v19  ;;  %2109 = vset.pattern.permute.xlu1 %v2224_v57  ;;  %v1810_v45 = vor.u32 %v1880_v41, %v1809_v31 }
 0x302   :  { %766 = vperm.xlu2 %2105, %v2561_v36   ;;  %522 = vperm.xlu1 %2109, %v2576_v39   ;;  %v674_v34 = vadd.f32 %v666_v35, %v609_v44  ;;  %v1805_v44 = vld [vmem:[%s3210_s4 + $0x48] sm:$0xf] }
 0x303   :  { %991 = vmatpush.bf16.msrb.mxu3 %v1810_v45 }
 0x304   :  { %v710_v46 = vpop.permute.xlu1 %709 }
 0x305   :  { %v731_v52 = vmul.f32 %v1960_v37, %v710_v46  ;;  %v1879_v37 = vld [vmem:[%s3210_s4 + $0x54] sm:$0xf0] }
 0x306   :  { %v1806_v46 = vor.u32 %v1879_v37, %v1805_v44 }
 0x307   :  { %v739_v53 = vadd.f32 %v731_v52, %v674_v34  ;;  %v2747_v34 = vpop.permute.xlu0 %697  ;;  %v2752_v52 = vld [vmem:[%s3215_s2 + $0x10] sm:$0xff]  }
 0x308   :  { %v2691_v54 = vpop.permute.xlu2 %502  ;;  %992 = vmatpush.bf16.msrb.mxu3 %v1806_v46 }
 0x30a   :  { %2111 = vset.pattern.permute.xlu2 %v2226_v14  ;;  %2110 = vset.pattern.permute.xlu1 %v2223_v55 }
 0x30b   :  { %652 = vperm.xlu2 %2111, %v2576_v39   ;;  %587 = vperm.xlu1 %2110, %v2576_v39  }
 0x30d   :  { %v775_v59 = vpop.permute.xlu1 %774 }
 0x30e   :  { %v796_v21 = vmul.f32 %v1976_v24, %v775_v59  ;;  %v1899_v24 = vunpack.c.l.bf16 %v2752_v52 }
 0x30f   :  { %v649_v41 = vpop.permute.xlu0 %648 }
 0x310   :  { %v804_v30 = vadd.f32 %v796_v21, %v739_v53  ;;  %v1915_v53 = vunpack.c.l.bf16 %v2737_v51  ;;  %v2767_v21 = vld [vmem:[%s3215_s2 + $0x70] sm:$0xff]  }
 0x311   :  { %v2700_v56 = vpop.permute.xlu2 %567 }
 0x312   :  { %v869_v42 = vadd.f32 %v861_v26, %v804_v30 }
 0x313   :  { %2112 = vset.pattern.permute.xlu2 %v2228_v17  ;;  %2114 = vset.pattern.permute.xlu1 %v2227_v15 }
 0x314   :  { %717 = vperm.xlu2 %2112, %v2576_v39   ;;  %847 = vperm.xlu1 %2114, %v2576_v39   ;;  %v2706_v18 = vadd.f32 %v926_v40, %v869_v42  ;;  %v2774_v40 = vld [vmem:[%s3215_s2 + $0x90] sm:$0xff]   ;;  %v1947_v42 = vunpack.c.l.bf16 %v2767_v21 }
 0x315   :  { %v1963_v44 = vunpack.c.l.bf16 %v2774_v40 }
 0x316   :  { %v667_v37 = vmul.f32 %v1947_v42, %v649_v41 }
 0x317   :  { %v2710_v48 = vpop.permute.xlu1 %438 }
 0x31b   :  { %v2712_v50 = vpop.permute.xlu2 %632 }
 0x31c   :  { %2119 = vset.pattern.permute.xlu2 %v2226_v14  ;;  %2115 = vset.pattern.permute.xlu1 %v2229_v60 }
 0x31d   :  { %656 = vperm.xlu2 %2119, %v2591_v43   ;;  %912 = vperm.xlu1 %2115, %v2576_v39  }
 0x321   :  { %v2718_v33 = vpop.permute.xlu1 %762 }
 0x324   :  { %v2726_v47 = vpop.permute.xlu2 %892 }
 0x325   :  { %2120 = vset.pattern.permute.xlu2 %v2228_v17  ;;  %2117 = vset.pattern.permute.xlu1 %v2224_v57 }
 0x326   :  { %721 = vperm.xlu2 %2120, %v2591_v43   ;;  %526 = vperm.xlu1 %2117, %v2591_v43  }
 0x32a   :  { %v2732_v49 = vpop.permute.xlu1 %827 }
 0x32e   :  { %2123 = vset.pattern.permute.xlu2 %v2225_v58  ;;  %2118 = vset.pattern.permute.xlu1 %v2223_v55  ;;  %v519_v35 = vpop.permute.xlu2 %518  ;;  %v2761_v55 = vld [vmem:[%s3215_s2 + $0x50] sm:$0xff]  }
 0x32f   :  { %591 = vperm.xlu1 %2118, %v2591_v43   ;;  %473 = vperm.xlu2 %2123, %v2624_v61   ;;  %v537_v38 = vmul.f32 %v1915_v53, %v519_v35  ;;  %v1931_v20 = vunpack.c.l.bf16 %v2761_v55  ;;  %v1878_v35 = vld [vmem:[%s3210_s4 + $0x34] sm:$0xf0] }
 0x333   :  { %v459_v58 = vpop.permute.xlu1 %458 }
 0x334   :  { %v480_v59 = vmul.f32 %v1899_v24, %v459_v58 }
 0x336   :  { %v545_v26 = vadd.f32 %v537_v38, %v480_v59  ;;  %v2793_v59 = vld [vmem:[%s3215_s2 + $0xb0] sm:$0xff]  }
 0x337   :  { %2122 = vset.pattern.permute.xlu1 %v2227_v15  ;;  %2124 = vset.pattern.permute.xlu2 %v2224_v57  ;;  %v584_v30 = vpop.permute.xlu2 %583  ;;  %v1801_v57 = vld [vmem:[%s3210_s4 + $0x28] sm:$0xf] }
 0x338   :  { %851 = vperm.xlu1 %2122, %v2591_v43   ;;  %530 = vperm.xlu2 %2124, %v2624_v61   ;;  %v602_v31 = vmul.f32 %v1931_v20, %v584_v30  ;;  %v1802_v53 = vor.u32 %v1878_v35, %v1801_v57  ;;  %v1979_v20 = vunpack.c.l.bf16 %v2793_v59 }
 0x33a   :  { %v610_v45 = vadd.f32 %v602_v31, %v545_v26  ;;  %993 = vmatpush.bf16.msrb.mxu3 %v1802_v53 }
 0x33c   :  { %v675_v24 = vadd.f32 %v667_v37, %v610_v45  ;;  %v1890_v45 = vld [vmem:[%s3215_s2] sm:$0xff]  }
 0x33d   :  { %v714_v46 = vpop.permute.xlu1 %713  ;;  %v1891_v37 = vunpack.c.l.bf16 %v1890_v45  ;;  %v1892_v27 = vunpack.c.h.bf16 %v1890_v45  ;;  %v2040_v45 = vld [vmem:[%s3215_s2 + $0xc0] sm:$0xff]  }
 0x33e   :  { %v732_v58 = vmul.f32 %v1963_v44, %v714_v46  ;;  %v2816_v44 = vld [vmem:[%s3214_s5 + $0x1] ss:$0 sm:$0xff] }
 0x33f   :  { %v2024_v46 = vld [vmem:[%s3215_s2 + $0x40] sm:$0xff]   ;;  %v476_v53 = vmul.f32 %v1891_v37, %v2710_v48  ;;  %v444_v37 = vpop.permute.xlu0 %443 }
 0x340   :  { %v740_v38 = vadd.f32 %v732_v58, %v675_v24  ;;  %2126 = vset.pattern.permute.xlu1 %v2226_v14  ;;  %2128 = vset.pattern.permute.xlu2 %v2230_v19  ;;  %v1797_v14 = vld [vmem:[%s3210_s4 + $0x8] sm:$0xf]  ;;  %v1877_v19 = vld [vmem:[%s3210_s4 + $0x14] sm:$0xf0]  ;;  %v2028_v24 = vld [vmem:[%s3215_s2 + $0x60] sm:$0xff]   ;;  %v1924_v48 = vunpack.c.h.bf16 %v2024_v46 }
 0x341   :  { %660 = vperm.xlu1 %2126, %v2624_v61   ;;  %790 = vperm.xlu2 %2128, %v2624_v61   ;;  %v2796_v26 = vpop.permute.xlu2 %843  ;;  %v1798_v31 = vor.u32 %v1877_v19, %v1797_v14 }
 0x343   :  { %994 = vmatpush.bf16.msrb.mxu3 %v1798_v31  ;;  %v2032_v31 = vld [vmem:[%s3215_s2 + $0x80] sm:$0xff]  }
 0x344   :  { %v1956_v22 = vunpack.c.h.bf16 %v2032_v31 }
 0x346   :  { %v779_v30 = vpop.permute.xlu1 %778 }
 0x347   :  { %v797_v42 = vmul.f32 %v1979_v20, %v779_v30 }
 0x349   :  { %v2804_v41 = vadd.f32 %v797_v42, %v740_v38  ;;  %2127 = vset.pattern.permute.xlu1 %v2228_v17  ;;  %2129 = vset.pattern.permute.xlu2 %v2227_v15  ;;  %v2020_v17 = vld [vmem:[%s3215_s2 + $0x20] sm:$0xff]   ;;  %v1923_v38 = vunpack.c.l.bf16 %v2024_v46 }
 0x34a   :  { %725 = vperm.xlu1 %2127, %v2624_v61   ;;  %855 = vperm.xlu2 %2129, %v2624_v61   ;;  %v2821_v15 = vpop.permute.xlu2 %908  ;;  %v1907_v35 = vunpack.c.l.bf16 %v2020_v17  ;;  %v1908_v30 = vunpack.c.h.bf16 %v2020_v17  ;;  %v1955_v17 = vunpack.c.l.bf16 %v2032_v31 }
 0x34b   :  { %v598_v14 = vmul.f32 %v1923_v38, %v2700_v56  ;;  %v1940_v56 = vunpack.c.h.bf16 %v2028_v24 }
 0x34c   :  { %v533_v58 = vmul.f32 %v1907_v35, %v2691_v54  ;;  %v2036_v54 = vld [vmem:[%s3215_s2 + $0xa0] sm:$0xff]  }
 0x34d   :  { %v1972_v29 = vunpack.c.h.bf16 %v2036_v54 }
 0x34e   :  { %v541_v20 = vadd.f32 %v533_v58, %v476_v53  ;;  %v477_v53 = vmul.f32 %v1892_v27, %v444_v37 }
 0x350   :  { %v507_v57 = vpop.permute.xlu1 %506  ;;  %v606_v39 = vadd.f32 %v598_v14, %v541_v20  ;;  %v728_v20 = vmul.f32 %v1955_v17, %v2747_v34 }
 0x351   :  { %v534_v35 = vmul.f32 %v1908_v30, %v507_v57 }
 0x352   :  { %2130 = vset.pattern.permute.xlu1 %v2229_v60  ;;  %1322 = vrot.lane.b32.xlu2 %v2816_v44, %s2231_s13  ;;  %v1939_v60 = vunpack.c.l.bf16 %v2028_v24  ;;  %v1988_v24 = vunpack.c.h.bf16 %v2040_v45 }
 0x353   :  { %916 = vperm.xlu1 %2130, %v2591_v43   ;;  %v702_v19 = vpop.permute.xlu2 %701  ;;  %v1971_v43 = vunpack.c.l.bf16 %v2036_v54  ;;  %v542_v46 = vadd.f32 %v534_v35, %v477_v53 }
 0x354   :  { %v663_v61 = vmul.f32 %v1939_v60, %v2712_v50  ;;  %v1987_v50 = vunpack.c.l.bf16 %v2040_v45 }
 0x355   :  { %v793_v27 = vmul.f32 %v1971_v43, %v2718_v33 }
 0x356   :  { %v671_v38 = vadd.f32 %v663_v61, %v606_v39  ;;  %v2044_v39 = vld [vmem:[%s3215_s2 + $0xe0] sm:$0xff]   ;;  %v729_v61 = vmul.f32 %v1956_v22, %v702_v19  ;;  %v858_v31 = vmul.f32 %v1987_v50, %v2732_v49  ;;  %v1900_v49 = vunpack.c.h.bf16 %v2752_v52 }
 0x357   :  { %v2003_v17 = vunpack.c.l.bf16 %v2044_v39  ;;  %v2004_v54 = vunpack.c.h.bf16 %v2044_v39 }
 0x358   :  { %v736_v57 = vadd.f32 %v728_v20, %v671_v38 }
 0x359   :  { %v572_v42 = vpop.permute.xlu1 %571  ;;  %v923_v38 = vmul.f32 %v2003_v17, %v2726_v47  ;;  %v1948_v47 = vunpack.c.h.bf16 %v2767_v21 }
 0x35a   :  { %v599_v58 = vmul.f32 %v1924_v48, %v572_v42  ;;  %v832_v48 = vpop.permute.xlu0 %831  ;;  %v801_v35 = vadd.f32 %v793_v27, %v736_v57 }
 0x35b   :  { %v859_v53 = vmul.f32 %v1988_v24, %v832_v48 }
 0x35c   :  { %v607_v14 = vadd.f32 %v599_v58, %v542_v46  ;;  %v767_v30 = vpop.permute.xlu2 %766 }
 0x35d   :  { %v794_v34 = vmul.f32 %v1972_v29, %v767_v30  ;;  %v1916_v29 = vunpack.c.h.bf16 %v2737_v51  ;;  %v3229_v51 = vpack.c.bf16 %v2706_v18, %v2670_v28 }
 0x362   :  { %v637_v60 = vpop.permute.xlu1 %636  ;;  %v464_v19 = vpop.permute.xlu0 %463 }
 0x363   :  { %v664_v13 = vmul.f32 %v1940_v56, %v637_v60  ;;  %v866_v56 = vadd.f32 %v858_v31, %v801_v35  ;;  %v481_v57 = vmul.f32 %v1900_v49, %v464_v19  ;;  %v1980_v31 = vunpack.c.h.bf16 %v2793_v59 }
 0x365   :  { %v672_v42 = vadd.f32 %v664_v13, %v607_v14  ;;  %v931_v46 = vadd.f32 %v923_v38, %v866_v56  ;;  %v653_v50 = vpop.permute.xlu2 %652  ;;  %v1932_v14 = vunpack.c.h.bf16 %v2761_v55  ;;  %v2042_v55 = vld [vmem:[%s3215_s2 + $0xd0] sm:$0xff]  }
 0x366   :  { %v1995_v35 = vunpack.c.l.bf16 %v2042_v55  ;;  %v1996_v17 = vunpack.c.h.bf16 %v2042_v55 }
 0x367   :  { %v737_v37 = vadd.f32 %v729_v61, %v672_v42  ;;  %v668_v61 = vmul.f32 %v1948_v47, %v653_v50  ;;  %v1964_v42 = vunpack.c.h.bf16 %v2774_v40  ;;  %v2046_v40 = vld [vmem:[%s3215_s2 + $0xf0] sm:$0xff]   ;;  %v2023_v47 = vld [vmem:[%s3215_s2 + $0x38] sm:$0xff]  }
 0x369   :  { %v802_v58 = vadd.f32 %v794_v34, %v737_v37 }
 0x36a   :  { %v783_v37 = vpop.permute.xlu0 %782 }
 0x36b   :  { %v897_v43 = vpop.permute.xlu1 %896  ;;  %v867_v33 = vadd.f32 %v859_v53, %v802_v58  ;;  %v798_v18 = vmul.f32 %v1980_v31, %v783_v37  ;;  %v862_v53 = vmul.f32 %v1995_v35, %v2796_v26  ;;  %v1920_v31 = vunpack.c.h.bf16 %v2023_v47 }
 0x36c   :  { %v924_v45 = vmul.f32 %v2004_v54, %v897_v43  ;;  %v2011_v54 = vunpack.c.l.bf16 %v2046_v40  ;;  %v2012_v43 = vunpack.c.h.bf16 %v2046_v40 }
 0x36d   :  { %v870_v59 = vadd.f32 %v862_v53, %v2804_v41  ;;  %v1884_v41 = vld [vmem:[%s3212_s3 + $0x24] sm:$0xf0] }
 0x36e   :  { %v932_v20 = vadd.f32 %v924_v45, %v867_v33  ;;  %v718_v52 = vpop.permute.xlu2 %717  ;;  %v927_v38 = vmul.f32 %v2011_v54, %v2821_v15 }
 0x36f   :  { %v733_v21 = vmul.f32 %v1964_v42, %v718_v52  ;;  %v1882_v42 = vld [vmem:[%s3212_s3 + $0xc] sm:$0xf0] }
 0x370   :  { %v939_v22 = vpack.c.bf16 %v932_v20, %v931_v46 }
 0x372   :  { %1811 = vmatmul.msk.bf16.vlgmr.msrb.gmra.mxu3 %vm36_vm0, %v939_v22  ;;  %v935_v22 = vadd.f32 %v927_v38, %v870_v59 }
 0x374   :  { %v523_v13 = vpop.permute.xlu1 %522 }
 0x375   :  { %v538_v60 = vmul.f32 %v1916_v29, %v523_v13 }
 0x377   :  { %v546_v30 = vadd.f32 %v538_v60, %v481_v57  ;;  %v657_v33 = vpop.permute.xlu2 %656  ;;  %v469_v60 = vpop.permute.xlu0 %468 }
 0x37d   :  { %v588_v27 = vpop.permute.xlu1 %587 }
 0x37e   :  { %v603_v24 = vmul.f32 %v1932_v14, %v588_v27  ;;  %v1825_v14 = vld [vmem:[%s3212_s3 + $0x1c] sm:$0xf] }
 0x37f   :  { %v1826_v15 = vor.u32 %v1884_v41, %v1825_v14  ;;  %v2019_v27 = vld [vmem:[%s3215_s2 + $0x18] sm:$0xff]  }
 0x380   :  { %v611_v39 = vadd.f32 %v603_v24, %v546_v30  ;;  %v722_v49 = vpop.permute.xlu2 %721  ;;  %v787_v24 = vpop.permute.xlu0 %786  ;;  %v1904_v37 = vunpack.c.h.bf16 %v2019_v27 }
 0x381   :  { %1086 = vmatpush.bf16.msrb.mxu0 %v1826_v15  ;;  %v2907_v15 = vpop.f32.mrf.mxu3 }
 0x382   :  { %1812 = vmatmul.msk.bf16.gmra.mxu3 %vm36_vm0, %v3229_v51  ;;  %v676_v48 = vadd.f32 %v668_v61, %v611_v39  ;;  %v1919_v39 = vunpack.c.l.bf16 %v2023_v47  ;;  %v1817_v61 = vld [vmem:[%s3212_s3 + $0x4] sm:$0xf]  ;;  %v2027_v51 = vld [vmem:[%s3215_s2 + $0x58] sm:$0xff]  }
 0x383   :  { %v1818_v52 = vor.u32 %v1882_v42, %v1817_v61  ;;  %v1935_v55 = vunpack.c.l.bf16 %v2027_v51  ;;  %v1936_v53 = vunpack.c.h.bf16 %v2027_v51  ;;  %v2047_v61 = vld [vmem:[%s3215_s2 + $0xf8] sm:$0xff]  }
 0x384   :  { %v741_v28 = vadd.f32 %v733_v21, %v676_v48  ;;  %v1903_v48 = vunpack.c.l.bf16 %v2019_v27 }
 0x385   :  { %1087 = vmatpush.bf16.msrb.mxu0 %v1818_v52 }
 0x386   :  { %v848_v34 = vpop.permute.xlu1 %847  ;;  %v806_v58 = vadd.f32 %v798_v18, %v741_v28  ;;  %v482_v40 = vmul.f32 %v1903_v48, %v469_v60 }
 0x387   :  { %v863_v56 = vmul.f32 %v1996_v17, %v848_v34  ;;  %v2031_v34 = vld [vmem:[%s3215_s2 + $0x78] sm:$0xff]  }
 0x388   :  { %v1951_v18 = vunpack.c.l.bf16 %v2031_v34  ;;  %v1952_v59 = vunpack.c.h.bf16 %v2031_v34  ;;  %v596_v38 = vpop.permute.xlu0 %595  ;;  %v2016_v34 = vunpack.c.h.bf16 %v2047_v61 }
 0x389   :  { %v871_v46 = vadd.f32 %v863_v56, %v806_v58  ;;  %v474_v50 = vpop.permute.xlu2 %473  ;;  %v2035_v58 = vld [vmem:[%s3215_s2 + $0x98] sm:$0xff]  }
 0x38a   :  { %v483_v56 = vmul.f32 %v1904_v37, %v474_v50  ;;  %v2043_v50 = vld [vmem:[%s3215_s2 + $0xd8] sm:$0xff]  }
 0x38b   :  { %v2000_v42 = vunpack.c.h.bf16 %v2043_v50  ;;  %v1999_v51 = vunpack.c.l.bf16 %v2043_v50 }
 0x38f   :  { %v913_v45 = vpop.permute.xlu1 %912 }
 0x390   :  { %v928_v20 = vmul.f32 %v2012_v43, %v913_v45 }
 0x392   :  { %v936_v13 = vadd.f32 %v928_v20, %v871_v46  ;;  %v531_v30 = vpop.permute.xlu2 %530  ;;  %v669_v20 = vmul.f32 %v1951_v18, %v657_v33 }
 0x393   :  { %v540_v17 = vmul.f32 %v1920_v31, %v531_v30 }
 0x394   :  { %v941_v29 = vpack.c.bf16 %v936_v13, %v935_v22  ;;  %v1967_v22 = vunpack.c.l.bf16 %v2035_v58  ;;  %v2039_v13 = vld [vmem:[%s3215_s2 + $0xb8] sm:$0xff]  }
 0x395   :  { %v548_v46 = vadd.f32 %v540_v17, %v483_v56  ;;  %v1984_v14 = vunpack.c.h.bf16 %v2039_v13  ;;  %v1983_v27 = vunpack.c.l.bf16 %v2039_v13  ;;  %v1881_v13 = vld [vmem:[%s3212_s3 + $0x8] sm:$0xf] }
 0x396   :  { %1813 = vmatmul.msk.bf16.gmra.mxu3 %vm36_vm0, %v941_v29  ;;  %v605_v29 = vmul.f32 %v1936_v53, %v596_v38  ;;  %v734_v47 = vmul.f32 %v1967_v22, %v722_v49  ;;  %v2015_v49 = vunpack.c.l.bf16 %v2047_v61 }
 0x398   :  { %v527_v19 = vpop.permute.xlu1 %526  ;;  %v613_v41 = vadd.f32 %v605_v29, %v548_v46  ;;  %v1819_v29 = vld [vmem:[%s3212_s3 + $0x10] sm:$0xf0] }
 0x399   :  { %v539_v21 = vmul.f32 %v1919_v39, %v527_v19 }
 0x39b   :  { %v547_v54 = vadd.f32 %v539_v21, %v482_v40  ;;  %v791_v43 = vpop.permute.xlu2 %790  ;;  %v799_v21 = vmul.f32 %v1983_v27, %v787_v24  ;;  %v2939_v27 = vld [vmem:[%s3214_s5 + $0x2] ss:$0 sm:$0xff] }
 0x39c   :  { %v800_v48 = vmul.f32 %v1984_v14, %v791_v43 }
 0x3a1   :  { %v592_v26 = vpop.permute.xlu1 %591 }
 0x3a2   :  { %v604_v35 = vmul.f32 %v1935_v55, %v592_v26  ;;  %v1968_v26 = vunpack.c.h.bf16 %v2035_v58 }
 0x3a4   :  { %v612_v45 = vadd.f32 %v604_v35, %v547_v54  ;;  %v856_v55 = vpop.permute.xlu2 %855  ;;  %v2912_v54 = vpop.f32.mrf.mxu3 }
 0x3a5   :  { %v865_v40 = vmul.f32 %v2000_v42, %v856_v55 }
 0x3a6   :  { %v677_v60 = vadd.f32 %v669_v20, %v612_v45  ;;  %v1827_v20 = vld [vmem:[%s3212_s3 + $0x28] sm:$0xf0] }
 0x3a8   :  { %v742_v52 = vadd.f32 %v734_v47, %v677_v60 }
 0x3aa   :  { %v852_v57 = vpop.permute.xlu1 %851  ;;  %v807_v35 = vadd.f32 %v799_v21, %v742_v52 }
 0x3ab   :  { %v864_v17 = vmul.f32 %v1999_v51, %v852_v57  ;;  %v1883_v57 = vld [vmem:[%s3212_s3 + $0x20] sm:$0xf] }
 0x3ac   :  { %v2915_v24 = vpop.f32.mrf.mxu3  ;;  %v1830_v22 = vor.u32 %v1883_v57, %v1827_v20  ;;  %v2967_v57 = vld [vmem:[%s3214_s5] ss:$0 sm:$0xff]  ;;  %s2232_s5 = smov 88  }
 0x3ad   :  { %v872_v56 = vadd.f32 %v864_v17, %v807_v35 }
 0x3ae   :  { %1115 = vmatpush.bf16.msra.mxu1 %v1830_v22 }
 0x3b3   :  { %v661_v28 = vpop.permute.xlu1 %660 }
 0x3b4   :  { %v670_v19 = vmul.f32 %v1952_v59, %v661_v28  ;;  %v921_v28 = vpop.permute.xlu0 %920  ;;  %v2917_v46 = vpop.f32.mrf.mxu3 }
 0x3b5   :  { %v930_v58 = vmul.f32 %v2016_v34, %v921_v28 }
 0x3b6   :  { %v678_v30 = vadd.f32 %v670_v19, %v613_v41  ;;  %v1822_v19 = vor.u32 %v1881_v13, %v1819_v29 }
 0x3b8   :  { %1116 = vmatpush.bf16.msra.mxu1 %v1822_v19 }
 0x3bc   :  { %v726_v33 = vpop.permute.xlu1 %725 }
 0x3bd   :  { %v735_v39 = vmul.f32 %v1968_v26, %v726_v33  ;;  %v2931_v26 = vpop.f32.mrf.mxu3 }
 0x3bf   :  { %v743_v31 = vadd.f32 %v735_v39, %v678_v30 }
 0x3c1   :  { %v808_v37 = vadd.f32 %v800_v48, %v743_v31 }
 0x3c3   :  { %v873_v18 = vadd.f32 %v865_v40, %v808_v37 }
 0x3c5   :  { %v917_v53 = vpop.permute.xlu1 %916  ;;  %v938_v45 = vadd.f32 %v930_v58, %v873_v18  ;;  %v2933_v60 = vpop.f32.mrf.mxu3 }
 0x3c6   :  { %v929_v59 = vmul.f32 %v2015_v49, %v917_v53 }
 0x3c8   :  { %v937_v38 = vadd.f32 %v929_v59, %v872_v56 }
 0x3ca   :  { %v942_v43 = vpack.c.bf16 %v938_v45, %v937_v38 }
 0x3cc   :  { %1814 = vmatmul.msk.bf16.gmra.mxu3 %vm36_vm0, %v942_v43 }
 0x3f5   :  { %v996_v14 = vpop.f32.mrf.mxu3 }
 0x3f6   :  { %v1016_v50 = vadd.f32 %v996_v14, %v2439_v8 }
 0x3f8   :  { %v1024_v47 = vadd.f32 %v2939_v27, %v1016_v50 }
 0x3fa   :  { %v1032_v39 = vmax.f32 %v1024_v47, 0.0 }
 0x3fd   :  { %v998_v41 = vpop.f32.mrf.mxu3 }
 0x3fe   :  { %v1017_v33 = vadd.f32 %v998_v41, %v2441_v9 }
 0x400   :  { %v1025_v30 = vadd.f32 %v2939_v27, %v1017_v33 }
 0x402   :  { %v1033_v61 = vmax.f32 %v1025_v30, 0.0 }
 0x404   :  { %v1040_v42 = vpack.c.bf16 %v1033_v61, %v1032_v39 }
 0x405   :  { %v1001_v51 = vpop.f32.mrf.mxu3 }
 0x406   :  { %1831 = vmatmul.msk.bf16.vlgmr.msrb.gmra.mxu0 %vm81_vm1, %v1040_v42  ;;  %1835 = vmatmul.msk.bf16.vlgmr.msra.gmra.mxu1 %vm81_vm1, %v1040_v42  ;;  %v1018_v8 = vadd.f32 %v1001_v51, %v2443_v10 }
 0x408   :  { %v1026_v48 = vadd.f32 %v2939_v27, %v1018_v8 }
 0x40a   :  { %v1034_v9 = vmax.f32 %v1026_v48, 0.0 }
 0x40d   :  { %v1003_v52 = vpop.f32.mrf.mxu3 }
 0x40e   :  { %v1019_v55 = vadd.f32 %v1003_v52, %v2445_v11 }
 0x410   :  { %v1027_v31 = vadd.f32 %v2939_v27, %v1019_v55 }
 0x412   :  { %v1035_v21 = vmax.f32 %v1027_v31, 0.0  ;;  %v2976_v31 = vpop.permute.xlu2 %1322 }
 0x414   :  { %v1041_v34 = vpack.c.bf16 %v1035_v21, %v1034_v9 }
 0x416   :  { %1832 = vmatmul.msk.bf16.gmra.mxu0 %vm81_vm1, %v1041_v34  ;;  %1836 = vmatmul.msk.bf16.gmra.mxu1 %vm81_vm1, %v1041_v34 }
 0x419   :  { %v1006_v37 = vpop.f32.mrf.mxu3 }
 0x41a   :  { %v1020_v40 = vadd.f32 %v1006_v37, %v2447_v12 }
 0x41c   :  { %v1028_v10 = vadd.f32 %v2939_v27, %v1020_v40 }
 0x41e   :  { %v1036_v11 = vmax.f32 %v1028_v10, 0.0 }
 0x421   :  { %v1008_v35 = vpop.f32.mrf.mxu3 }
 0x422   :  { %v1021_v17 = vadd.f32 %v1008_v35, %v2453_v16 }
 0x424   :  { %v1029_v49 = vadd.f32 %v2939_v27, %v1021_v17  ;;  %v1325_v17 = vadd.f32 %v2976_v31, %v2415_v2 }
 0x426   :  { %v1037_v28 = vmax.f32 %v1029_v49, 0.0 }
 0x428   :  { %v1042_v18 = vpack.c.bf16 %v1037_v28, %v1036_v11 }
 0x42a   :  { %1833 = vmatmul.msk.bf16.gmra.mxu0 %vm81_vm1, %v1042_v18  ;;  %1837 = vmatmul.msk.bf16.gmra.mxu1 %vm81_vm1, %v1042_v18 }
 0x44f   :  { %v1011_v53 = vpop.f32.mrf.mxu3 }
 0x450   :  { %v1022_v58 = vadd.f32 %v1011_v53, %v2457_v23 }
 0x452   :  { %v1030_v12 = vadd.f32 %v2939_v27, %v1022_v58 }
 0x454   :  { %v1038_v16 = vmax.f32 %v1030_v12, 0.0 }
 0x457   :  { %v1013_v56 = vpop.f32.mrf.mxu3 }
 0x458   :  { %v1023_v59 = vadd.f32 %v1013_v56, %v2463_v32 }
 0x45a   :  { %v1031_v38 = vadd.f32 %v2939_v27, %v1023_v59 }
 0x45c   :  { %v1039_v45 = vmax.f32 %v1031_v38, 0.0 }
 0x45e   :  { %v1043_v43 = vpack.c.bf16 %v1039_v45, %v1038_v16 }
 0x460   :  { %1834 = vmatmul.msk.bf16.gmra.mxu0 %vm81_vm1, %v1043_v43  ;;  %1838 = vmatmul.msk.bf16.gmra.mxu1 %vm81_vm1, %v1043_v43 }
 0x483   :  { %v1089_v23 = vpop.f32.mrf.mxu0  ;;  %v1118_v8 = vpop.f32.mrf.mxu1 }
 0x484   :  { %v1138_v20 = vadd.f32 %v1089_v23, %v2403_v62  ;;  %v1314_v18 = vadd.f32 %v2816_v44, %v1118_v8 }
 0x486   :  { %v1150_v22 = vadd.f32 %v2967_v57, %v1138_v20 }
 0x488   :  { %v1839_v32 = vmul.f32 -1.442695, %v1150_v22 }
 0x48a   :  { %2167 = vpow2.f32 %v1839_v32  ;;  %v1326_v32 = vadd.f32 %v2976_v31, %v2423_v4 }
 0x48b   :  { %v1091_v13 = vpop.f32.mrf.mxu0  ;;  %v1120_v56 = vpop.f32.mrf.mxu1 }
 0x48c   :  { %v1139_v29 = vadd.f32 %v1091_v13, %v2409_v0 }
 0x48e   :  { %v1151_v19 = vadd.f32 %v2967_v57, %v1139_v29 }
 0x490   :  { %v2168_v14 = vpop.eup %2167  ;;  %v1840_v50 = vmul.f32 -1.442695, %v1151_v19 }
 0x491   :  { %v1182_v41 = vadd.f32 1.0, %v2168_v14 }
 0x492   :  { %2169 = vpow2.f32 %v1840_v50 }
 0x493   :  { %2171 = vrcp.f32 %v1182_v41  ;;  %v1094_v47 = vpop.f32.mrf.mxu0  ;;  %v1201_v55 = vand.u32 2147483648, %v1182_v41  ;;  %vm1195_vm5 = vweird.f32 %v1182_v41 }
 0x494   :  { %v1140_v33 = vadd.f32 %v1094_v47, %v2907_v15  ;;  %v1199_v15 = vand.u32 2147483647, %v1182_v41 }
 0x495   :  { %v1202_v10 = vor.u32 1.1754944e-38, %v1201_v55  ;;  %v1327_v55 = vadd.f32 %v2976_v31, %v2405_v63 }
 0x496   :  { %v1152_v30 = vadd.f32 %v2967_v57, %v1140_v33  ;;  %vm1200_vm7 = vcmp.eq.f32.partialorder %v1199_v15, 8.507059e+37 }
 0x498   :  { %v2170_v62 = vpop.eup %2169  ;;  %v1841_v39 = vmul.f32 -1.442695, %v1152_v30 }
 0x499   :  { %v2172_v61 = vpop.eup %2171  ;;  %v1183_v42 = vadd.f32 1.0, %v2170_v62 }
 0x49a   :  { %v1191_v51 = vmul.f32 %v2172_v61, %v1182_v41  ;;  %2173 = vpow2.f32 %v1841_v39  ;;  %vm1196_vm4 = vweird.f32 %v2172_v61  ;;  %v1315_v41 = vadd.f32 %v2816_v44, %v1120_v56 }
 0x49b   :  { %2175 = vrcp.f32 %v1183_v42  ;;  %v1096_v0 = vpop.f32.mrf.mxu0  ;;  %vm1197_vm6 = vmor %vm1195_vm5, %vm1196_vm4  ;;  %v1216_v12 = vand.u32 2147483648, %v1183_v42  ;;  %v1214_v16 = vand.u32 2147483647, %v1183_v42  ;;  %vm1210_vm9 = vweird.f32 %v1183_v42 }
 0x49c   :  { %v1192_v52 = vsub.f32 1.0, %v1191_v51  ;;  %v1141_v48 = vadd.f32 %v1096_v0, %v2912_v54 }
 0x49d   :  { %v1217_v22 = vor.u32 1.1754944e-38, %v1216_v12  ;;  %vm1215_vm11 = vcmp.eq.f32.partialorder %v1214_v16, 8.507059e+37 }
 0x49e   :  { %v1193_v9 = vmul.f32 %v2172_v61, %v1192_v52  ;;  %v1153_v21 = vadd.f32 %v2967_v57, %v1141_v48 }
 0x4a0   :  { %v2174_v34 = vpop.eup %2173  ;;  %v1194_v37 = vadd.f32 %v2172_v61, %v1193_v9  ;;  %v1842_v40 = vmul.f32 -1.442695, %v1153_v21 }
 0x4a1   :  { %v2176_v35 = vpop.eup %2175  ;;  %v1184_v49 = vadd.f32 1.0, %v2174_v34 }
 0x4a2   :  { %v1198_v54 = vsel %vm1197_vm6, %v2172_v61, %v1194_v37  ;;  %v1206_v11 = vmul.f32 %v2176_v35, %v1183_v42  ;;  %2177 = vpow2.f32 %v1842_v40  ;;  %vm1211_vm8 = vweird.f32 %v2176_v35  ;;  %v1123_v42 = vpop.f32.mrf.mxu1 }
 0x4a3   :  { %v2981_v28 = vsel %vm1200_vm7, %v1202_v10, %v1198_v54  ;;  %2179 = vrcp.f32 %v1184_v49  ;;  %vm1212_vm10 = vmor %vm1210_vm9, %vm1211_vm8  ;;  %v1229_v30 = vand.u32 2147483647, %v1184_v49  ;;  %v1231_v62 = vand.u32 2147483648, %v1184_v49 }
 0x4a4   :  { %v1333_v53 = vmul.f32 %v1325_v17, %v2981_v28  ;;  %v1207_v58 = vsub.f32 1.0, %v1206_v11  ;;  %vm1225_vm13 = vweird.f32 %v1184_v49  ;;  %v1316_v40 = vadd.f32 %v2816_v44, %v1123_v42  ;;  %v2217_v42 = vld [vmem:[#allocation2 + $0x18] sm:$0xff] }
 0x4a5   :  { %v1232_v48 = vor.u32 1.1754944e-38, %v1231_v62  ;;  %vm1230_vm15 = vcmp.eq.f32.partialorder %v1229_v30, 8.507059e+37 }
 0x4a6   :  { %v1341_v59 = vadd.f32 %v1333_v53, %v1314_v18  ;;  %v1208_v38 = vmul.f32 %v2176_v35, %v1207_v58  ;;  %v2216_v53 = vld [vmem:[#allocation2] sm:$0xff] }
 0x4a7   :  { %v1099_v2 = vpop.f32.mrf.mxu0 }
 0x4a8   :  { %v2178_v45 = vpop.eup %2177  ;;  %2181 = vtanh.f32 %v1341_v59  ;;  %v1209_v43 = vadd.f32 %v2176_v35, %v1208_v38  ;;  %v1142_v23 = vadd.f32 %v1099_v2, %v2915_v24  ;;  %v1328_v38 = vadd.f32 %v2976_v31, %v2411_v1 }
 0x4a9   :  { %v2180_v20 = vpop.eup %2179  ;;  %v1185_v13 = vadd.f32 1.0, %v2178_v45 }
 0x4aa   :  { %v1213_v29 = vsel %vm1212_vm10, %v2176_v35, %v1209_v43  ;;  %v1221_v19 = vmul.f32 %v2180_v20, %v1184_v49  ;;  %v1154_v14 = vadd.f32 %v2967_v57, %v1142_v23  ;;  %vm1226_vm12 = vweird.f32 %v2180_v20  ;;  %v1125_v56 = vpop.f32.mrf.mxu1 }
 0x4ab   :  { %v2989_v50 = vsel %vm1215_vm11, %v1217_v22, %v1213_v29  ;;  %2183 = vrcp.f32 %v1185_v13  ;;  %vm1227_vm14 = vmor %vm1225_vm13, %vm1226_vm12  ;;  %v1244_v17 = vand.u32 2147483647, %v1185_v13  ;;  %v1246_v49 = vand.u32 2147483648, %v1185_v13 }
 0x4ac   :  { %v1334_v47 = vmul.f32 %v1326_v32, %v2989_v50  ;;  %v1222_v24 = vsub.f32 1.0, %v1221_v19  ;;  %v1843_v33 = vmul.f32 -1.442695, %v1154_v14  ;;  %vm1240_vm2 = vweird.f32 %v1185_v13 }
 0x4ad   :  { %v1247_v12 = vor.u32 1.1754944e-38, %v1246_v49  ;;  %vm1245_vm4 = vcmp.eq.f32.partialorder %v1244_v17, 8.507059e+37  ;;  %v1317_v45 = vadd.f32 %v2816_v44, %v1125_v56 }
 0x4ae   :  { %v2182_v39 = vpop.eup %2181  ;;  %v1342_v61 = vadd.f32 %v1334_v47, %v1315_v41  ;;  %v1223_v4 = vmul.f32 %v2180_v20, %v1222_v24  ;;  %2185 = vpow2.f32 %v1843_v33 }
 0x4af   :  { %v1101_v51 = vpop.f32.mrf.mxu0  ;;  %1373 = vrot.lane.b32.xlu1 %v2182_v39, %s2231_s13  ;;  %v1329_v39 = vadd.f32 %v2976_v31, %v2419_v3 }
 0x4b0   :  { %2187 = vtanh.f32 %v1342_v61  ;;  %v1224_v8 = vadd.f32 %v2180_v20, %v1223_v4  ;;  %v1143_v0 = vadd.f32 %v1101_v51, %v2917_v46 }
 0x4b1   :  { %v2184_v52 = vpop.eup %2183 }
 0x4b2   :  { %v1228_v9 = vsel %vm1227_vm14, %v2180_v20, %v1224_v8  ;;  %v1236_v15 = vmul.f32 %v2184_v52, %v1185_v13  ;;  %v1155_v21 = vadd.f32 %v2967_v57, %v1143_v0  ;;  %vm1241_vm1 = vweird.f32 %v2184_v52  ;;  %v1128_v41 = vpop.f32.mrf.mxu1 }
 0x4b3   :  { %v2998_v34 = vsel %vm1230_vm15, %v1232_v48, %v1228_v9  ;;  %vm1242_vm3 = vmor %vm1240_vm2, %vm1241_vm1  ;;  %v1318_v51 = vadd.f32 %v2816_v44, %v1128_v41  ;;  %v1331_v41 = vadd.f32 %v2976_v31, %v2431_v6 }
 0x4b4   :  { %v2186_v37 = vpop.eup %2185  ;;  %v1335_v35 = vmul.f32 %v1327_v55, %v2998_v34  ;;  %v1237_v10 = vsub.f32 1.0, %v1236_v15  ;;  %v1844_v46 = vmul.f32 -1.442695, %v1155_v21 }
 0x4b5   :  { %v1186_v54 = vadd.f32 1.0, %v2186_v37 }
 0x4b6   :  { %v2188_v11 = vpop.eup %2187  ;;  %v1343_v18 = vadd.f32 %v1335_v35, %v1316_v40  ;;  %v1238_v63 = vmul.f32 %v2184_v52, %v1237_v10  ;;  %2189 = vpow2.f32 %v1844_v46  ;;  %v1330_v40 = vadd.f32 %v2976_v31, %v2427_v5  ;;  %v2218_v10 = vld [vmem:[#allocation2 + $0x20] sm:$0xff] }
 0x4b7   :  { %2191 = vrcp.f32 %v1186_v54  ;;  %1375 = vrot.lane.b32.xlu2 %v2188_v11, %s2231_s13  ;;  %1413 = vrot.lane.b32.xlu1 %v2216_v53, %s2231_s13  ;;  %v1261_v19 = vand.u32 2147483648, %v1186_v54  ;;  %v1259_v1 = vand.u32 2147483647, %v1186_v54  ;;  %vm1255_vm6 = vweird.f32 %v1186_v54 }
 0x4b8   :  { %2193 = vtanh.f32 %v1343_v18  ;;  %v1239_v58 = vadd.f32 %v2184_v52, %v1238_v63  ;;  %v2219_v18 = vld [vmem:[#allocation2 + $0x28] sm:$0xff] }
 0x4b9   :  { %v1262_v33 = vor.u32 1.1754944e-38, %v1261_v19  ;;  %vm1260_vm8 = vcmp.eq.f32.partialorder %v1259_v1, 8.507059e+37 }
 0x4ba   :  { %v1243_v59 = vsel %vm1242_vm3, %v2184_v52, %v1239_v58  ;;  %v1130_v15 = vpop.f32.mrf.mxu1 }
 0x4bb   :  { %v3006_v16 = vsel %vm1245_vm4, %v1247_v12, %v1243_v59  ;;  %v1319_v46 = vadd.f32 %v2816_v44, %v1130_v15 }
 0x4bc   :  { %v2190_v2 = vpop.eup %2189  ;;  %v1336_v43 = vmul.f32 %v1328_v38, %v3006_v16 }
 0x4bd   :  { %v2192_v23 = vpop.eup %2191  ;;  %v1187_v20 = vadd.f32 1.0, %v2190_v2 }
 0x4be   :  { %v2194_v22 = vpop.eup %2193  ;;  %v1344_v32 = vadd.f32 %v1336_v43, %v1317_v45  ;;  %v1251_v13 = vmul.f32 %v2192_v23, %v1186_v54  ;;  %vm1256_vm5 = vweird.f32 %v2192_v23 }
 0x4bf   :  { %2195 = vrcp.f32 %v1187_v20  ;;  %1377 = vrot.lane.b32.xlu2 %v2194_v22, %s2231_s13  ;;  %vm1257_vm7 = vmor %vm1255_vm6, %vm1256_vm5  ;;  %v1276_v52 = vand.u32 2147483648, %v1187_v20  ;;  %v1274_v9 = vand.u32 2147483647, %v1187_v20  ;;  %vm1270_vm10 = vweird.f32 %v1187_v20 }
 0x4c0   :  { %2197 = vtanh.f32 %v1344_v32  ;;  %v1252_v29 = vsub.f32 1.0, %v1251_v13  ;;  %vm1657_vm6 = vcmask 654336  }
 0x4c1   :  { %v1277_v21 = vor.u32 1.1754944e-38, %v1276_v52  ;;  %vm1275_vm12 = vcmp.eq.f32.partialorder %v1274_v9, 8.507059e+37 }
 0x4c2   :  { %v1253_v14 = vmul.f32 %v2192_v23, %v1252_v29 }
 0x4c4   :  { %v1254_v47 = vadd.f32 %v2192_v23, %v1253_v14 }
 0x4c5   :  { %v2196_v24 = vpop.eup %2195 }
 0x4c6   :  { %v2198_v30 = vpop.eup %2197  ;;  %v1258_v62 = vsel %vm1257_vm7, %v2192_v23, %v1254_v47  ;;  %v1266_v61 = vmul.f32 %v2196_v24, %v1187_v20  ;;  %vm1271_vm9 = vweird.f32 %v2196_v24  ;;  %vm1666_vm7 = vcmask 719872  }
 0x4c7   :  { %v3013_v4 = vsel %vm1260_vm8, %v1262_v33, %v1258_v62  ;;  %1419 = vrot.lane.b32.xlu2 %v2217_v42, %s2231_s13  ;;  %1379 = vrot.lane.b32.xlu1 %v2198_v30, %s2231_s13  ;;  %vm1272_vm11 = vmor %vm1270_vm10, %vm1271_vm9 }
 0x4c8   :  { %v1337_v8 = vmul.f32 %v1329_v39, %v3013_v4  ;;  %v1267_v0 = vsub.f32 1.0, %v1266_v61 }
 0x4ca   :  { %v1345_v48 = vadd.f32 %v1337_v8, %v1318_v51  ;;  %v1268_v55 = vmul.f32 %v2196_v24, %v1267_v0 }
 0x4cc   :  { %2199 = vtanh.f32 %v1345_v48  ;;  %v1269_v3 = vadd.f32 %v2196_v24, %v1268_v55  ;;  %v1332_v48 = vadd.f32 %v2976_v31, %v2435_v7  ;;  %v1358_v7 = vsub.f32 1.0, %v2989_v50  ;;  %v1416_v31 = vpop.permute.xlu0 %1415 }
 0x4ce   :  { %v1273_v37 = vsel %vm1272_vm11, %v2196_v24, %v1269_v3 }
 0x4cf   :  { %v3021_v35 = vsel %vm1275_vm12, %v1277_v21, %v1273_v37  ;;  %1421 = vrot.lane.b32.xlu2 %v2218_v10, %s2231_s13 }
 0x4d0   :  { %v1338_v17 = vmul.f32 %v1330_v40, %v3021_v35  ;;  %v2220_v40 = vld [vmem:[#allocation2 + $0x38] sm:$0xff] }
 0x4d2   :  { %v2200_v49 = vpop.eup %2199  ;;  %v1346_v54 = vadd.f32 %v1338_v17, %v1319_v46 }
 0x4d3   :  { %1381 = vrot.lane.b32.xlu1 %v2200_v49, %s2231_s13 }
 0x4d4   :  { %2201 = vtanh.f32 %v1346_v54  ;;  %v1438_v54 = vmul.f32 %v1416_v31, %v2989_v50  ;;  %v1360_v50 = vsub.f32 1.0, %v3006_v16 }
 0x4da   :  { %v2202_v11 = vpop.eup %2201 }
 0x4db   :  { %1383 = vrot.lane.b32.xlu0 %v2202_v11, %s2231_s13  ;;  %1423 = vrot.lane.b32.xlu1 %v2219_v18, %s2231_s13 }
 0x4dd   :  { %v1104_v5 = vpop.f32.mrf.mxu0  ;;  %v1133_v19 = vpop.f32.mrf.mxu1 }
 0x4de   :  { %v1144_v63 = vadd.f32 %v1104_v5, %v2931_v26  ;;  %v1320_v33 = vadd.f32 %v2816_v44, %v1133_v19 }
 0x4e0   :  { %v1156_v53 = vadd.f32 %v2967_v57, %v1144_v63 }
 0x4e2   :  { %v1845_v58 = vmul.f32 -1.442695, %v1156_v53 }
 0x4e4   :  { %2203 = vpow2.f32 %v1845_v58 }
 0x4e5   :  { %v1106_v56 = vpop.f32.mrf.mxu0  ;;  %v1135_v0 = vpop.f32.mrf.mxu1 }
 0x4e6   :  { %v1145_v12 = vadd.f32 %v1106_v56, %v2933_v60  ;;  %v1321_v9 = vadd.f32 %v2816_v44, %v1135_v0  ;;  %v1357_v44 = vsub.f32 1.0, %v2981_v28  ;;  %v1359_v56 = vsub.f32 1.0, %v2998_v34 }
 0x4e8   :  { %v1157_v59 = vadd.f32 %v2967_v57, %v1145_v12  ;;  %v1418_v12 = vpop.permute.xlu0 %1417 }
 0x4ea   :  { %v2204_v38 = vpop.eup %2203  ;;  %v1846_v2 = vmul.f32 -1.442695, %v1157_v59 }
 0x4eb   :  { %v1188_v45 = vadd.f32 1.0, %v2204_v38 }
 0x4ec   :  { %2205 = vpow2.f32 %v1846_v2  ;;  %v2221_v2 = vld [vmem:[#allocation2 + $0x30] sm:$0xff] }
 0x4ed   :  { %2207 = vrcp.f32 %v1188_v45  ;;  %v1291_v32 = vand.u32 2147483648, %v1188_v45  ;;  %v1289_v29 = vand.u32 2147483647, %v1188_v45  ;;  %vm1285_vm14 = vweird.f32 %v1188_v45 }
 0x4ef   :  { %v1292_v57 = vor.u32 1.1754944e-38, %v1291_v32  ;;  %vm1290_vm1 = vcmp.eq.f32.partialorder %v1289_v29, 8.507059e+37 }
 0x4f2   :  { %v2206_v43 = vpop.eup %2205 }
 0x4f3   :  { %v2208_v23 = vpop.eup %2207  ;;  %v1189_v20 = vadd.f32 1.0, %v2206_v43 }
 0x4f4   :  { %v1281_v22 = vmul.f32 %v2208_v23, %v1188_v45  ;;  %vm1286_vm13 = vweird.f32 %v2208_v23 }
 0x4f5   :  { %2209 = vrcp.f32 %v1189_v20  ;;  %vm1287_vm15 = vmor %vm1285_vm14, %vm1286_vm13  ;;  %v1306_v39 = vand.u32 2147483648, %v1189_v20  ;;  %v1304_v51 = vand.u32 2147483647, %v1189_v20  ;;  %vm1300_vm3 = vweird.f32 %v1189_v20 }
 0x4f6   :  { %v1282_v26 = vsub.f32 1.0, %v1281_v22 }
 0x4f7   :  { %v1307_v52 = vor.u32 1.1754944e-38, %v1306_v39  ;;  %vm1305_vm5 = vcmp.eq.f32.partialorder %v1304_v51, 8.507059e+37  ;;  %v1853_v39 = vld [vmem:[%s3210_s4 + $0x2c] sm:$0xf] }
 0x4f8   :  { %v1283_v13 = vmul.f32 %v2208_v23, %v1282_v26  ;;  %v1849_v51 = vld [vmem:[%s3210_s4 + $0xc] sm:$0xf] }
 0x4fa   :  { %v1284_v14 = vadd.f32 %v2208_v23, %v1283_v13  ;;  %v1361_v13 = vsub.f32 1.0, %v3013_v4 }
 0x4fb   :  { %v2210_v60 = vpop.eup %2209 }
 0x4fc   :  { %v1288_v1 = vsel %vm1287_vm15, %v2208_v23, %v1284_v14  ;;  %v1296_v47 = vmul.f32 %v2210_v60, %v1189_v20  ;;  %vm1301_vm2 = vweird.f32 %v2210_v60  ;;  %v1362_v14 = vsub.f32 1.0, %v3021_v35 }
 0x4fd   :  { %v3035_v24 = vsel %vm1290_vm1, %v1292_v57, %v1288_v1  ;;  %vm1302_vm4 = vmor %vm1300_vm3, %vm1301_vm2 }
 0x4fe   :  { %v1339_v30 = vmul.f32 %v1331_v41, %v3035_v24  ;;  %v1297_v62 = vsub.f32 1.0, %v1296_v47 }
 0x500   :  { %v1347_v61 = vadd.f32 %v1339_v30, %v1320_v33  ;;  %v1298_v42 = vmul.f32 %v2210_v60, %v1297_v62  ;;  %v1887_v62 = vld [vmem:[%s3210_s4 + $0x58] sm:$0xf0] }
 0x502   :  { %2211 = vtanh.f32 %v1347_v61  ;;  %v1299_v8 = vadd.f32 %v2210_v60, %v1298_v42  ;;  %v1886_v61 = vld [vmem:[%s3210_s4 + $0x38] sm:$0xf0] }
 0x503   :  { %v1854_v42 = vor.u32 %v1886_v61, %v1853_v39 }
 0x504   :  { %v1303_v6 = vsel %vm1302_vm4, %v2210_v60, %v1299_v8 }
 0x505   :  { %v3041_v55 = vsel %vm1305_vm5, %v1307_v52, %v1303_v6 }
 0x506   :  { %v1340_v3 = vmul.f32 %v1332_v48, %v3041_v55  ;;  %v1364_v48 = vsub.f32 1.0, %v3041_v55 }
 0x508   :  { %v2212_v15 = vpop.eup %2211  ;;  %v1348_v21 = vadd.f32 %v1340_v3, %v1321_v9  ;;  %v1363_v3 = vsub.f32 1.0, %v3035_v24 }
 0x509   :  { %1385 = vrot.lane.b32.xlu2 %v2212_v15, %s2231_s13 }
 0x50a   :  { %2213 = vtanh.f32 %v1348_v21 }
 0x510   :  { %v2214_v37 = vpop.eup %2213 }
 0x511   :  { %1427 = vrot.lane.b32.xlu2 %v2220_v40, %s2231_s13  ;;  %1387 = vrot.lane.b32.xlu1 %v2214_v37, %s2231_s13  ;;  %v1376_v46 = vpop.permute.xlu2 %1375 }
 0x512   :  { %v1398_v17 = vmul.f32 %v1376_v46, %v1358_v7 }
 0x514   :  { %v3052_v5 = vadd.f32 %v1438_v54, %v1398_v17 }
 0x519   :  { %v1378_v53 = vpop.permute.xlu2 %1377 }
 0x51a   :  { %v1399_v38 = vmul.f32 %v1378_v53, %v1359_v56 }
 0x521   :  { %v1374_v10 = vpop.permute.xlu1 %1373  ;;  %v1420_v59 = vpop.permute.xlu2 %1419 }
 0x522   :  { %v1397_v11 = vmul.f32 %v1374_v10, %v1357_v44  ;;  %v1440_v43 = vmul.f32 %v1420_v59, %v3006_v16  ;;  %v3230_v44 = vld [vmem:[#allocation3_spill] sm:$0xff] }
 0x529   :  { %v1414_v49 = vpop.permute.xlu1 %1413  ;;  %v1422_v29 = vpop.permute.xlu2 %1421 }
 0x52a   :  { %v1437_v18 = vmul.f32 %v1414_v49, %v2981_v28  ;;  %v1439_v28 = vmul.f32 %v1418_v12, %v2998_v34  ;;  %v1441_v16 = vmul.f32 %v1422_v29, %v3013_v4  ;;  %v1888_v4 = vld [vmem:[%s3210_s4 + $0x78] sm:$0xf0]  ;;  %v3233_v29 = vld [vmem:[#allocation7_spill] sm:$0xff] }
 0x52c   :  { %v1445_v63 = vadd.f32 %v1437_v18, %v1397_v11  ;;  %v1447_v20 = vadd.f32 %v1439_v28, %v1399_v38  ;;  %v3231_v18 = vld [vmem:[#allocation5_spill] sm:$0xff] }
 0x52e   :  { %v1453_v58 = vpack.c.bf16 %v3052_v5, %v1445_v63 }
 0x530   :  { %1469 = vrot.lane.b32.xlu0 %v1453_v58, %s2231_s13 }
 0x538   :  { %1425 = vrot.lane.b32.xlu0 %v2221_v2, %s2231_s13 }
 0x539   :  { %v1380_v45 = vpop.permute.xlu1 %1379 }
 0x53a   :  { %v1400_v23 = vmul.f32 %v1380_v45, %v1360_v50 }
 0x53c   :  { %v1448_v22 = vadd.f32 %v1440_v43, %v1400_v23 }
 0x53e   :  { %v1454_v26 = vpack.c.bf16 %v1448_v22, %v1447_v20 }
 0x540   :  { %1471 = vrot.lane.b32.xlu1 %v1454_v26, %s2231_s13 }
 0x545   :  { %v1382_v32 = vpop.permute.xlu1 %1381 }
 0x546   :  { %v1401_v19 = vmul.f32 %v1382_v32, %v1361_v13 }
 0x548   :  { %1542 = vrot.lane.b32.xlu1 %v2939_v27, %s2232_s5  ;;  %v1449_v41 = vadd.f32 %v1441_v16, %v1401_v19  ;;  %v1861_v27 = vld [vmem:[%s3210_s4 + $0x6c] sm:$0xf] }
 0x549   :  { %v1862_v30 = vor.u32 %v1888_v4, %v1861_v27 }
 0x54b   :  { %1517 = vmatpush.bf16.msrb.mxu2 %v1862_v30  ;;  %v3234_v30 = vld [vmem:[#allocation8_spill] sm:$0xff] }
 0x54d   :  { %v1384_v60 = vpop.permute.xlu0 %1383  ;;  %v1424_v34 = vpop.permute.xlu1 %1423 }
 0x54e   :  { %v1402_v57 = vmul.f32 %v1384_v60, %v1362_v14  ;;  %v1442_v1 = vmul.f32 %v1424_v34, %v3021_v35  ;;  %v1857_v35 = vld [vmem:[%s3210_s4 + $0x4c] sm:$0xf] }
 0x550   :  { %v1450_v47 = vadd.f32 %v1442_v1, %v1402_v57  ;;  %1565 = vrot.lane.b32.xlu1 %v1447_v20, %s2231_s13 }
 0x552   :  { %v1455_v33 = vpack.c.bf16 %v1450_v47, %v1449_v41 }
 0x554   :  { %1473 = vrot.lane.b32.xlu0 %v1455_v33, %s2231_s13 }
 0x558   :  { %1571 = vrot.lane.b32.xlu1 %v1450_v47, %s2231_s13 }
 0x55c   :  { %1561 = vrot.lane.b32.xlu0 %v1445_v63, %s2231_s13  ;;  %v3232_v63 = vld [vmem:[#allocation4_spill] sm:$0xff] }
 0x560   :  { %1627 = vrot.lane.b32.xlu1 %v2561_v36, %s2233_s21  ;;  %v1858_v36 = vor.u32 %v1887_v62, %v1857_v35 }
 0x562   :  { %1518 = vmatpush.bf16.msrb.mxu2 %v1858_v36 }
 0x563   :  { %v1386_v0 = vpop.permute.xlu2 %1385 }
 0x564   :  { %1567 = vrot.lane.b32.xlu0 %v1448_v22, %s2231_s13  ;;  %v1403_v37 = vmul.f32 %v1386_v0, %v1363_v3 }
 0x566   :  { %1519 = vmatpush.bf16.msrb.mxu2 %v1854_v42  ;;  %v3235_v42 = vld [vmem:[#allocation6_spill] sm:$0xff] }
 0x568   :  { %1633 = vrot.lane.b32.xlu1 %v2553_v25, %s2233_s21  ;;  %v1885_v25 = vld [vmem:[%s3210_s4 + $0x18] sm:$0xf0] }
 0x569   :  { %v1850_v8 = vor.u32 %v1885_v25, %v1849_v51 }
 0x56b   :  { %1520 = vmatpush.bf16.msrb.mxu2 %v1850_v8  ;;  %v1428_v9 = vpop.permute.xlu2 %1427 }
 0x56c   :  { %v1444_v40 = vmul.f32 %v1428_v9, %v3041_v55 }
 0x583   :  { %v1388_v6 = vpop.permute.xlu1 %1387 }
 0x584   :  { %v1404_v15 = vmul.f32 %v1388_v6, %v1364_v48 }
 0x586   :  { %v1452_v46 = vadd.f32 %v1444_v40, %v1404_v15 }
 0x5a2   :  { %v1470_v52 = vpop.permute.xlu0 %1469 }
 0x5a3   :  { %1863 = vmatmul.msk.bf16.vlgmr.msrb.gmra.mxu2 %vm36_vm0, %v1470_v52 }
 0x5aa   :  { %v1426_v21 = vpop.permute.xlu0 %1425 }
 0x5ab   :  { %v1443_v10 = vmul.f32 %v1426_v21, %v3035_v24 }
 0x5ad   :  { %v1451_v7 = vadd.f32 %v1443_v10, %v1403_v37 }
 0x5af   :  { %1573 = vrot.lane.b32.xlu0 %v1451_v7, %s2231_s13  ;;  %v1456_v31 = vpack.c.bf16 %v1452_v46, %v1451_v7 }
 0x5b1   :  { %1475 = vrot.lane.b32.xlu2 %v1456_v31, %s2231_s13 }
 0x5b2   :  { %v1472_v17 = vpop.permute.xlu1 %1471 }
 0x5b3   :  { %1864 = vmatmul.msk.bf16.gmra.mxu2 %vm36_vm0, %v1472_v17 }
 0x5b7   :  { %1629 = vrot.lane.b32.xlu0 %v3230_v44, %s2233_s21 }
 0x5b9   :  { %1563 = vrot.lane.b32.xlu2 %v3052_v5, %s2231_s13 }
 0x5ba   :  { %v1543_v49 = vpop.permute.xlu1 %1542 }
 0x5c1   :  { %1569 = vrot.lane.b32.xlu2 %v1449_v41, %s2231_s13 }
 0x5c2   :  { %v1566_v24 = vpop.permute.xlu1 %1565 }
 0x5c3   :  { %1587 = vst.msk [vmem:[#allocation2 + $0x10] sm:$0xff] %vm36_vm0, %v1566_v24 }
 0x5c6   :  { %v1474_v55 = vpop.permute.xlu0 %1473 }
 0x5c7   :  { %1865 = vmatmul.msk.bf16.gmra.mxu2 %vm36_vm0, %v1474_v55 }
 0x5c9   :  { %1575 = vrot.lane.b32.xlu2 %v1452_v46, %s2231_s13 }
 0x5ca   :  { %v3116_v54 = vpop.permute.xlu1 %1571 }
 0x5cb   :  { %1590 = vst.msk [vmem:[#allocation2 + $0x28] sm:$0xff] %vm36_vm0, %v3116_v54 }
 0x5ce   :  { %v1562_v11 = vpop.permute.xlu0 %1561 }
 0x5cf   :  { %1585 = vst.msk [vmem:[#allocation2] sm:$0xff] %vm36_vm0, %v1562_v11 }
 0x5d1   :  { %1625 = vrot.lane.b32.xlu2 %v3231_v18, %s2233_s21 }
 0x5d2   :  { %v1628_v14 = vpop.permute.xlu1 %1627 }
 0x5d6   :  { %v3123_v5 = vpop.permute.xlu0 %1567 }
 0x5d7   :  { %1588 = vst.msk [vmem:[#allocation2 + $0x18] sm:$0xff] %vm36_vm0, %v3123_v5 }
 0x5d9   :  { %1631 = vrot.lane.b32.xlu2 %v3232_v63, %s2233_s21 }
 0x5da   :  { %v1634_v57 = vpop.permute.xlu1 %1633 }
 0x60b   :  { %v1476_v53 = vpop.permute.xlu2 %1475 }
 0x60c   :  { %1866 = vmatmul.msk.bf16.gmra.mxu2 %vm36_vm0, %v1476_v53 }
 0x613   :  { %v1564_v58 = vpop.permute.xlu2 %1563 }
 0x614   :  { %1586 = vst.msk [vmem:[#allocation2 + $0x8] sm:$0xff] %vm36_vm0, %v1564_v58 }
 0x61b   :  { %v3131_v56 = vpop.permute.xlu2 %1569 }
 0x61c   :  { %1589 = vst.msk [vmem:[#allocation2 + $0x20] sm:$0xff] %vm36_vm0, %v3131_v56 }
 0x621   :  { %v3135_v12 = vpop.permute.xlu0 %1573 }
 0x622   :  { %1591 = vst.msk [vmem:[#allocation2 + $0x30] sm:$0xff] %vm36_vm0, %v3135_v12 }
 0x623   :  { %v3139_v59 = vpop.permute.xlu2 %1575 }
 0x624   :  { %1592 = vst.msk [vmem:[#allocation2 + $0x38] sm:$0xff] %vm36_vm0, %v3139_v59 }
 0x626   :  { %v1522_v38 = vpop.f32.mrf.mxu2 }
 0x627   :  { %v1545_v2 = vadd.f32 %v1543_v49, %v1522_v38 }
 0x629   :  { %1601 = vrot.lane.b32.xlu1 %v1545_v2, %s2231_s13  ;;  %v1630_v41 = vpop.permute.xlu0 %1629 }
 0x62b   :  { %v1626_v19 = vpop.permute.xlu2 %1625 }
 0x62e   :  { %v1524_v50 = vpop.f32.mrf.mxu2 }
 0x62f   :  { %v1546_v45 = vadd.f32 %v1543_v49, %v1524_v50 }
 0x631   :  { %1603 = vrot.lane.b32.xlu0 %v1546_v45, %s2231_s13 }
 0x633   :  { %v1632_v60 = vpop.permute.xlu2 %1631 }
 0x636   :  { %v1527_v28 = vpop.f32.mrf.mxu2 }
 0x637   :  { %v1547_v43 = vadd.f32 %v1543_v49, %v1527_v28 }
 0x639   :  { %1605 = vrot.lane.b32.xlu2 %v1547_v43, %s2231_s13 }
 0x63e   :  { %v1529_v23 = vpop.f32.mrf.mxu2 }
 0x63f   :  { %v1548_v20 = vadd.f32 %v1543_v49, %v1529_v23 }
 0x641   :  { %1607 = vrot.lane.b32.xlu1 %v1548_v20, %s2231_s13 }
 0x64a   :  { %v1532_v22 = vpop.f32.mrf.mxu2 }
 0x64b   :  { %v1549_v26 = vadd.f32 %v1543_v49, %v1532_v22 }
 0x64d   :  { %1609 = vrot.lane.b32.xlu0 %v1549_v26, %s2231_s13 }
 0x652   :  { %v1534_v32 = vpop.f32.mrf.mxu2 }
 0x653   :  { %v1550_v13 = vadd.f32 %v1543_v49, %v1534_v32 }
 0x655   :  { %1611 = vrot.lane.b32.xlu2 %v1550_v13, %s2231_s13 }
 0x65d   :  { %1637 = vrot.lane.b32.xlu2 %v3233_v29, %s2233_s21 }
 0x68f   :  { %v1537_v34 = vpop.f32.mrf.mxu2 }
 0x690   :  { %v1551_v16 = vadd.f32 %v1543_v49, %v1537_v34 }
 0x692   :  { %1613 = vrot.lane.b32.xlu1 %v1551_v16, %s2231_s13 }
 0x693   :  { %v1606_v1 = vpop.permute.xlu2 %1605 }
 0x694   :  { %v1651_v47 = vsel %vm36_vm0, %v1566_v24, %v1606_v1 }
 0x695   :  { %v1660_v33 = vsel %vm1657_vm6, %v1651_v47, %v1630_v41 }
 0x696   :  { %v1669_v27 = vsel %vm1666_vm7, %v1660_v33, 0.0 }
 0x697   :  { %1677 = vst [vmem:[%s3216_s6 + $0x10] sm:$0xff] %v1669_v27  ;;  %v1539_v4 = vpop.f32.mrf.mxu2 }
 0x698   :  { %v1552_v35 = vadd.f32 %v1543_v49, %v1539_v4 }
 0x69a   :  { %1615 = vrot.lane.b32.xlu0 %v1552_v35, %s2231_s13  ;;  %1639 = vrot.lane.b32.xlu1 %v3234_v30, %s2233_s21 }
 0x69b   :  { %v1602_v62 = vpop.permute.xlu1 %1601 }
 0x69c   :  { %v1649_v36 = vsel %vm36_vm0, %v1562_v11, %v1602_v62 }
 0x69d   :  { %v1658_v39 = vsel %vm1657_vm6, %v1649_v36, %v1626_v19 }
 0x69e   :  { %v1667_v61 = vsel %vm1666_vm7, %v1658_v39, 0.0 }
 0x69f   :  { %1675 = vst [vmem:[%s3216_s6] sm:$0xff] %v1667_v61 }
 0x6a2   :  { %1635 = vrot.lane.b32.xlu0 %v3235_v42, %s2233_s21 }
 0x6a3   :  { %v1604_v51 = vpop.permute.xlu0 %1603 }
 0x6a4   :  { %v1650_v25 = vsel %vm36_vm0, %v1564_v58, %v1604_v51 }
 0x6a5   :  { %v1659_v8 = vsel %vm1657_vm6, %v1650_v25, %v1628_v14 }
 0x6a6   :  { %v1668_v0 = vsel %vm1666_vm7, %v1659_v8, 0.0 }
 0x6a7   :  { %1676 = vst [vmem:[%s3216_s6 + $0x8] sm:$0xff] %v1668_v0 }
 0x6af   :  { %v1612_v40 = vpop.permute.xlu2 %1611 }
 0x6b0   :  { %v1654_v18 = vsel %vm36_vm0, %v3116_v54, %v1612_v40 }
 0x6b3   :  { %v1608_v52 = vpop.permute.xlu1 %1607 }
 0x6b4   :  { %v1652_v6 = vsel %vm36_vm0, %v3123_v5, %v1608_v52 }
 0x6b5   :  { %v1661_v48 = vsel %vm1657_vm6, %v1652_v6, %v1632_v60 }
 0x6b6   :  { %v1670_v9 = vsel %vm1666_vm7, %v1661_v48, 0.0 }
 0x6b7   :  { %1678 = vst [vmem:[%s3216_s6 + $0x18] sm:$0xff] %v1670_v9  ;;  %v1638_v46 = vpop.permute.xlu2 %1637 }
 0x6bf   :  { %v1610_v3 = vpop.permute.xlu0 %1609 }
 0x6c0   :  { %v1653_v15 = vsel %vm36_vm0, %v3131_v56, %v1610_v3 }
 0x6c1   :  { %v1662_v21 = vsel %vm1657_vm6, %v1653_v15, %v1634_v57 }
 0x6c2   :  { %v1671_v37 = vsel %vm1666_vm7, %v1662_v21, 0.0 }
 0x6c3   :  { %1679 = vst [vmem:[%s3216_s6 + $0x20] sm:$0xff] %v1671_v37 }
 0x704   :  { %v1614_v10 = vpop.permute.xlu1 %1613 }
 0x705   :  { %v1655_v7 = vsel %vm36_vm0, %v3135_v12, %v1614_v10 }
 0x706   :  { %v1664_v31 = vsel %vm1657_vm6, %v1655_v7, %v1638_v46 }
 0x707   :  { %v1673_v17 = vsel %vm1666_vm7, %v1664_v31, 0.0 }
 0x708   :  { %1681 = vst [vmem:[%s3216_s6 + $0x30] sm:$0xff] %v1673_v17 }
 0x70c   :  { %v1616_v44 = vpop.permute.xlu0 %1615  ;;  %v1640_v49 = vpop.permute.xlu1 %1639 }
 0x70d   :  { %v1656_v24 = vsel %vm36_vm0, %v3139_v59, %v1616_v44 }
 0x70e   :  { %v1665_v55 = vsel %vm1657_vm6, %v1656_v24, %v1640_v49 }
 0x70f   :  { %v1674_v11 = vsel %vm1666_vm7, %v1665_v55, 0.0 }
 0x710   :  { %1682 = vst [vmem:[%s3216_s6 + $0x38] sm:$0xff] %v1674_v11 }
 0x714   :  { %v1636_v5 = vpop.permute.xlu0 %1635 }
 0x715   :  { %v1663_v63 = vsel %vm1657_vm6, %v1654_v18, %v1636_v5 }
 0x716   :  { %v1672_v53 = vsel %vm1666_vm7, %v1663_v63, 0.0 }
 0x717   :  { %1680 = vst [vmem:[%s3216_s6 + $0x28] sm:$0xff] %v1672_v53 }

</bundles_post_ra>
